<compile_context>
chip_gen: v7x
topology: tpu7x:2x2x1
jax: 0.10.0
libtpu: 0.0.40
codegen_flags: <defaults>
</compile_context>

<pallas_src>
import functools
import math

import jax
import jax.numpy as jnp
from jax.experimental import pallas as pl
from jax.experimental.pallas import tpu as pltpu


_LOGIT_PAD = 128                 # lane-dense logits store


# ----------------------------------------------------------------------------
# Generation-aware tiling / VMEM limits
# ----------------------------------------------------------------------------
def _vmem_capacity_bytes():
    try:
        return int(pltpu.get_tpu_info().vmem_capacity_bytes)
    except Exception:
        return 64 * 1024 * 1024          # conservative (v7x-sized) fallback


_VMEM_CAP = _vmem_capacity_bytes()
if _VMEM_CAP >= 96 * (1 << 20):          # v5e / v6e: 128 MiB physical VMEM
    _VMEM_LIMIT = 96 * (1 << 20)
    _ROW_TARGET = 1024
    _FFN_ROW_TARGET = 512
else:                                    # v7x: 64 MiB physical VMEM
    _VMEM_LIMIT = 48 * (1 << 20)
    _ROW_TARGET = 512
    _FFN_ROW_TARGET = 256
_SEQ_TARGET = 256                        # attention query tile target


def _cparams(n_parallel):
    return pltpu.CompilerParams(
        dimension_semantics=("parallel",) * n_parallel,
        vmem_limit_bytes=_VMEM_LIMIT)


def _row_tile(m, target):
    """Row tile + padded row count. Prefers an exact multiple-of-8 divisor of m;
    otherwise pads m up to a multiple of `target` (no whole-array fallback)."""
    if m <= target:
        return m, m
    for t in range(target, 7, -8):
        if m % t == 0:
            return t, m
    return target, ((m + target - 1) // target) * target


def _pad_rows(x, rows):
    if x.shape[0] == rows:
        return x
    return jnp.pad(x, ((0, rows - x.shape[0]), (0, 0)))


def _seq_tile(s, target=_SEQ_TARGET):
    if s <= target:
        return s
    for t in range(target, 7, -8):
        if s % t == 0:
            return t
    return s


# ----------------------------------------------------------------------------
# Single-buffering of grid-invariant weights (feature-detected)
# ----------------------------------------------------------------------------
def _probe_single_buffer():
    """Check that pipeline_mode=pl.Buffered(1) compiles, runs and is correct."""
    try:
        w_spec = pl.BlockSpec((8, 128), lambda i: (0, 0),
                              pipeline_mode=pl.Buffered(1))

        def _k(x_ref, w_ref, o_ref):
            o_ref[...] = x_ref[...] + w_ref[...]

        out = pl.pallas_call(
            _k,
            out_shape=jax.ShapeDtypeStruct((16, 128), jnp.float32),
            grid=(2,),
            in_specs=[pl.BlockSpec((8, 128), lambda i: (i, 0)), w_spec],
            out_specs=pl.BlockSpec((8, 128), lambda i: (i, 0)),
        )(jnp.zeros((16, 128), jnp.float32), jnp.ones((8, 128), jnp.float32))
        return bool(jnp.all(jax.block_until_ready(out) == 1.0))
    except Exception:
        return False


_SINGLE_BUFFER_WEIGHTS = _probe_single_buffer()


def _w_spec(shape, index_map):
    """BlockSpec for a grid-invariant operand (weights/biases/LN params)."""
    if _SINGLE_BUFFER_WEIGHTS:
        return pl.BlockSpec(shape, index_map, pipeline_mode=pl.Buffered(1))
    return pl.BlockSpec(shape, index_map)


# ----------------------------------------------------------------------------
# Pallas kernels
# ----------------------------------------------------------------------------
def _linear_kernel(x_ref, w_ref, b_ref, o_ref, *, act):
    y = jnp.dot(x_ref[...], w_ref[...], preferred_element_type=jnp.float32)
    y = y + b_ref[...]
    if act == "relu":
        y = jnp.maximum(y, 0.0)
    elif act == "tanh":
        y = jnp.tanh(y)
    o_ref[...] = y.astype(o_ref.dtype)


def linear(x, w, b, act="none"):
    M, K = x.shape
    N = w.shape[1]
    tm, Mp = _row_tile(M, _ROW_TARGET)
    xp = _pad_rows(x, Mp)
    out = pl.pallas_call(
        functools.partial(_linear_kernel, act=act),
        out_shape=jax.ShapeDtypeStruct((Mp, N), x.dtype),
        grid=(Mp // tm,),
        in_specs=[pl.BlockSpec((tm, K), lambda i: (i, 0)),
                  _w_spec((K, N), lambda i: (0, 0)),
                  _w_spec((1, N), lambda i: (0, 0))],
        out_specs=pl.BlockSpec((tm, N), lambda i: (i, 0)),
        compiler_params=_cparams(1),
    )(xp, w, b.reshape(1, N))
    return out[:M] if Mp != M else out


def _layernorm_kernel(x_ref, g_ref, b_ref, o_ref, *, eps):
    x = x_ref[...].astype(jnp.float32)
    mu = jnp.mean(x, axis=-1, keepdims=True)
    var = jnp.mean((x - mu) * (x - mu), axis=-1, keepdims=True)
    y = (x - mu) * jax.lax.rsqrt(var + eps)
    o_ref[...] = (y * g_ref[...] + b_ref[...]).astype(o_ref.dtype)


def layernorm(x, g, b, eps=1e-12):
    M, N = x.shape
    tm, Mp = _row_tile(M, _ROW_TARGET)
    xp = _pad_rows(x, Mp)
    out = pl.pallas_call(
        functools.partial(_layernorm_kernel, eps=eps),
        out_shape=jax.ShapeDtypeStruct((Mp, N), x.dtype),
        grid=(Mp // tm,),
        in_specs=[pl.BlockSpec((tm, N), lambda i: (i, 0)),
                  _w_spec((1, N), lambda i: (0, 0)),
                  _w_spec((1, N), lambda i: (0, 0))],
        out_specs=pl.BlockSpec((tm, N), lambda i: (i, 0)),
        compiler_params=_cparams(1),
    )(xp, g.reshape(1, N), b.reshape(1, N))
    return out[:M] if Mp != M else out


def _qkv_kernel(x_ref, w_ref, b_ref, q_ref, k_ref, v_ref):
    # One fused (H, 3H) matmul; x read from HBM once; three lane-dense stores.
    H = q_ref.shape[-1]
    y = (jnp.dot(x_ref[...], w_ref[...], preferred_element_type=jnp.float32)
         + b_ref[...])
    q_ref[...] = y[:, :H].astype(q_ref.dtype)
    k_ref[...] = y[:, H:2 * H].astype(k_ref.dtype)
    v_ref[...] = y[:, 2 * H:].astype(v_ref.dtype)


def qkv_proj(x, wqkv, bqkv):
    M, H = x.shape
    tm, Mp = _row_tile(M, _ROW_TARGET)
    xp = _pad_rows(x, Mp)
    row = pl.BlockSpec((tm, H), lambda i: (i, 0))
    out = jax.ShapeDtypeStruct((Mp, H), x.dtype)
    q, k, v = pl.pallas_call(
        _qkv_kernel,
        out_shape=(out, out, out),
        grid=(Mp // tm,),
        in_specs=[row,
                  _w_spec((H, 3 * H), lambda i: (0, 0)),
                  _w_spec((1, 3 * H), lambda i: (0, 0))],
        out_specs=(row, row, row),
        compiler_params=_cparams(1),
    )(xp, wqkv, bqkv.reshape(1, 3 * H))
    if Mp != M:
        q, k, v = q[:M], k[:M], v[:M]
    return q, k, v


def _attn_out_ln_kernel(q_ref, k_ref, v_ref, m_ref, x_ref, wo_ref, bo_ref,
                        g_ref, bln_ref, o_ref, *, n_heads, scale, eps):
    # LN(x + MHSA(q,k,v) @ Wo + bo): all heads per step, bf16 into the MXU,
    # per-head context folded straight into the output projection accumulator
    # (no concat, no ctx HBM round trip).
    mask = m_ref[...]                                     # (1, S) additive, f32
    H = q_ref.shape[-1]
    dh = H // n_heads
    acc = x_ref[...].astype(jnp.float32) + bo_ref[...]    # residual + proj bias
    for h in range(n_heads):
        sl = slice(h * dh, (h + 1) * dh)
        # q_h @ k_h^T via dot_general contracting last dims (no explicit .T).
        s = jax.lax.dot_general(q_ref[:, sl], k_ref[:, sl],
                                (((1,), (1,)), ((), ())),
                                preferred_element_type=jnp.float32)
        s = s * scale + mask
        s = s - jnp.max(s, axis=-1, keepdims=True)
        p = jnp.exp(s)
        p = p * pl.reciprocal(jnp.sum(p, axis=-1, keepdims=True), approx=True)
        ctx = jnp.dot(p.astype(v_ref.dtype), v_ref[:, sl],
                      preferred_element_type=jnp.float32)          # (tq, dh)
        acc = acc + jnp.dot(ctx.astype(wo_ref.dtype), wo_ref[sl, :],
                            preferred_element_type=jnp.float32)    # (tq, H)
    mu = jnp.mean(acc, axis=-1, keepdims=True)
    var = jnp.mean((acc - mu) * (acc - mu), axis=-1, keepdims=True)
    n = (acc - mu) * jax.lax.rsqrt(var + eps)
    o_ref[...] = (n * g_ref[...] + bln_ref[...]).astype(o_ref.dtype)


def attention_block(q, k, v, mask_add, x, wo, bo, g, bln, n_heads, eps=1e-12):
    B, S, H = q.shape
    dh = H // n_heads
    tq = _seq_tile(S)
    q_spec = pl.BlockSpec((pl.Squeezed(), tq, H), lambda b, i: (b, i, 0))
    kv_spec = pl.BlockSpec((pl.Squeezed(), S, H), lambda b, i: (b, 0, 0))
    m_spec = pl.BlockSpec((pl.Squeezed(), 1, S), lambda b, i: (b, 0, 0))
    return pl.pallas_call(
        functools.partial(_attn_out_ln_kernel, n_heads=n_heads,
                          scale=1.0 / math.sqrt(dh), eps=eps),
        out_shape=jax.ShapeDtypeStruct((B, S, H), x.dtype),
        grid=(B, S // tq),
        in_specs=[q_spec, kv_spec, kv_spec, m_spec, q_spec,
                  _w_spec((H, H), lambda b, i: (0, 0)),
                  _w_spec((1, H), lambda b, i: (0, 0)),
                  _w_spec((1, H), lambda b, i: (0, 0)),
                  _w_spec((1, H), lambda b, i: (0, 0))],
        out_specs=q_spec,
        compiler_params=_cparams(2),
    )(q, k, v, mask_add, x, wo, bo.reshape(1, H), g.reshape(1, H),
      bln.reshape(1, H))


def _ffn_residual_ln_kernel(x_ref, wi_ref, bi_ref, wo_ref, bo_ref, g_ref,
                            bln_ref, o_ref, *, eps):
    # LN(x + GELU(x @ Wi + bi) @ Wo + bo): intermediate never leaves VMEM.
    x = x_ref[...]
    h = (jnp.dot(x, wi_ref[...], preferred_element_type=jnp.float32)
         + bi_ref[...])
    # TODO(synk): HF PubMedBERT uses erf-GELU; tanh-approx used for the clean
    # EUP lowering (small numerical drift vs. the PyTorch reference).
    h = jax.nn.gelu(h, approximate=True).astype(x.dtype)
    y = (jnp.dot(h, wo_ref[...], preferred_element_type=jnp.float32)
         + bo_ref[...])
    r = x.astype(jnp.float32) + y
    mu = jnp.mean(r, axis=-1, keepdims=True)
    var = jnp.mean((r - mu) * (r - mu), axis=-1, keepdims=True)
    n = (r - mu) * jax.lax.rsqrt(var + eps)
    o_ref[...] = (n * g_ref[...] + bln_ref[...]).astype(o_ref.dtype)


def ffn_residual_ln(x, wi, bi, wo, bo, g, bln, eps=1e-12):
    M, H = x.shape
    I = wi.shape[1]
    tm, Mp = _row_tile(M, _FFN_ROW_TARGET)   # (tm, I) intermediate lives in VMEM
    xp = _pad_rows(x, Mp)
    row = pl.BlockSpec((tm, H), lambda i: (i, 0))
    vec = _w_spec((1, H), lambda i: (0, 0))
    out = pl.pallas_call(
        functools.partial(_ffn_residual_ln_kernel, eps=eps),
        out_shape=jax.ShapeDtypeStruct((Mp, H), x.dtype),
        grid=(Mp // tm,),
        in_specs=[row,
                  _w_spec((H, I), lambda i: (0, 0)),
                  _w_spec((1, I), lambda i: (0, 0)),
                  _w_spec((I, H), lambda i: (0, 0)),
                  vec, vec, vec],
        out_specs=row,
        compiler_params=_cparams(1),
    )(xp, wi, bi.reshape(1, I), wo, bo.reshape(1, H),
      g.reshape(1, H), bln.reshape(1, H))
    return out[:M] if Mp != M else out


def _head_kernel(pooled_ref, kw_ref, wk_ref, bk_ref, wf_p_ref, wf_k_ref,
                 bf_ref, wc_ref, bc_ref, o_ref):
    # kw_out = relu(keyword_fc(keyword_features))  -- kept in f32.
    kw = (jnp.dot(kw_ref[...], wk_ref[...], preferred_element_type=jnp.float32)
          + bk_ref[...])
    kw = jnp.maximum(kw, 0.0)
    # x = relu(fc(cat([pooled, kw_out], dim=1))) as split matmuls.
    h = (jnp.dot(pooled_ref[...], wf_p_ref[...],
                 preferred_element_type=jnp.float32)
         + jnp.dot(kw.astype(wf_k_ref.dtype), wf_k_ref[...],
                   preferred_element_type=jnp.float32)
         + bf_ref[...])
    h = jnp.maximum(h, 0.0)
    # dropout(p=0.2) is identity at inference time.
    o_ref[...] = (jnp.dot(h.astype(wc_ref.dtype), wc_ref[...],
                          preferred_element_type=jnp.float32)
                  + bc_ref[...]).astype(o_ref.dtype)


def classifier_head(pooled, kw_feats, params, num_labels):
    B, H = pooled.shape
    K = kw_feats.shape[1]
    full = lambda *shape: pl.BlockSpec(shape, lambda: (0,) * len(shape))
    logits_pad = pl.pallas_call(
        _head_kernel,
        out_shape=jax.ShapeDtypeStruct((B, _LOGIT_PAD), jnp.float32),
        in_specs=[full(B, H), full(B, K),
                  full(K, 48), full(1, 48),
                  full(H, 192), full(48, 192), full(1, 192),
                  full(192, _LOGIT_PAD), full(1, _LOGIT_PAD)],
        out_specs=full(B, _LOGIT_PAD),
        compiler_params=pltpu.CompilerParams(vmem_limit_bytes=_VMEM_LIMIT),
    )(pooled, kw_feats,
      params["kw_w"], params["kw_b"].reshape(1, 48),
      params["fc_w_p"], params["fc_w_k"], params["fc_b"].reshape(1, 192),
      params["cls_w_pad"], params["cls_b_pad"])
    return logits_pad[:, :num_labels]


# ----------------------------------------------------------------------------
# Mini-BERT encoder (plain-JAX glue calling the kernels above)
# ----------------------------------------------------------------------------
def bert_pooled_output(params, input_ids, attention_mask, cfg):
    B, S = input_ids.shape
    H, nH = cfg["hidden"], cfg["heads"]

    emb = (params["word_emb"][input_ids]
           + params["pos_emb"][:S][None, :, :]
           + params["type_emb"][0][None, None, :])
    x = layernorm(emb.reshape(B * S, H), params["emb_ln_g"], params["emb_ln_b"])

    # Additive key mask, shaped (B, 1, S) so the kernel block is lane-dense.
    mask_add = ((1.0 - attention_mask.astype(jnp.float32)) * -1e9
                ).reshape(B, 1, S)

    for layer in params["layers"]:
        # Fused Q/K/V projection (one matmul, one activation read from HBM).
        q, k, v = qkv_proj(x, layer["wqkv"], layer["bqkv"])
        # Attention + output projection + residual + LayerNorm fused.
        x = attention_block(q.reshape(B, S, H), k.reshape(B, S, H),
                            v.reshape(B, S, H), mask_add, x.reshape(B, S, H),
                            layer["wo"], layer["bo"],
                            layer["ln1_g"], layer["ln1_b"], nH)
        x = x.reshape(B * S, H)
        # FFN pair + residual + LayerNorm fused (intermediate stays in VMEM).
        x = ffn_residual_ln(x, layer["wi"], layer["bi"],
                            layer["wo2"], layer["bo2"],
                            layer["ln2_g"], layer["ln2_b"])

    cls = x.reshape(B, S, H)[:, 0, :]
    pooled = linear(cls, params["pool_w"], params["pool_b"], act="tanh")
    return pooled


def pubmedbert_classifier_forward(params, input_ids, attention_mask,
                                  keyword_features, cfg):
    pooled = bert_pooled_output(params, input_ids, attention_mask, cfg)
    return classifier_head(pooled, keyword_features, params, cfg["num_labels"])


# ----------------------------------------------------------------------------
# Deterministic parameter init (bf16 matmul weights, f32 biases / LN params).
# Classifier-head constants (logit lane padding, fc split) are prepared here,
# not in the forward path.
# ----------------------------------------------------------------------------
def init_params(key, cfg, dtype=jnp.bfloat16):
    H, I = cfg["hidden"], cfg["intermediate"]
    num_labels = cfg["num_labels"]
    keys = iter(jax.random.split(key, 256))
    nrm = lambda *s: (jax.random.normal(next(keys), s, jnp.float32)
                      * 0.02).astype(dtype)
    nrm32 = lambda *s: jax.random.normal(next(keys), s, jnp.float32) * 0.02
    zeros = lambda *s: jnp.zeros(s, jnp.float32)
    ones = lambda *s: jnp.ones(s, jnp.float32)

    cls_w = nrm(192, num_labels)
    cls_b = zeros(num_labels)
    params = {
        "word_emb": nrm(cfg["vocab"], H),
        "pos_emb": nrm(cfg["max_pos"], H),
        "type_emb": nrm(2, H),
        "emb_ln_g": ones(H), "emb_ln_b": zeros(H),
        "layers": [],
        "pool_w": nrm(H, H), "pool_b": zeros(H),
        # classification head (matches the PyTorch module shapes)
        "kw_w": nrm32(cfg["num_keywords"], 48), "kw_b": zeros(48),
        "fc_w_p": nrm(H, 192), "fc_w_k": nrm(48, 192), "fc_b": zeros(192),
        "cls_w_pad": jnp.zeros((192, _LOGIT_PAD), dtype
                               ).at[:, :num_labels].set(cls_w),
        "cls_b_pad": jnp.zeros((1, _LOGIT_PAD), jnp.float32
                               ).at[:, :num_labels].set(cls_b.reshape(1, -1)),
    }
    for _ in range(cfg["layers"]):
        params["layers"].append({
            "wqkv": nrm(H, 3 * H), "bqkv": zeros(3 * H),
            "wo": nrm(H, H), "bo": zeros(H),
            "ln1_g": ones(H), "ln1_b": zeros(H),
            "wi": nrm(H, I), "bi": zeros(I),
            "wo2": nrm(I, H), "bo2": zeros(H),
            "ln2_g": ones(H), "ln2_b": zeros(H),
        })
    return params


# TODO(synk): pretrained-checkpoint loading (AutoModel.from_pretrained) and
# parameter freezing are training/IO concerns with no kernel equivalent;
# dropout is identity at inference and therefore omitted.

if __name__ == "__main__":
    cfg = dict(vocab=128, hidden=32, heads=2, layers=2, intermediate=64,
               max_pos=64, num_keywords=8, num_labels=4)
    B, S = 2, 8

    root = jax.random.PRNGKey(0)
    k_params, k_ids, k_mask, k_kw = jax.random.split(root, 4)
    params = init_params(k_params, cfg)

    input_ids = jax.random.randint(k_ids, (B, S), 0, cfg["vocab"], jnp.int32)
    attention_mask = jnp.concatenate(
        [jnp.ones((B, S - 2), jnp.int32), jnp.zeros((B, 2), jnp.int32)], axis=1)
    keyword_features = jax.random.normal(k_kw, (B, cfg["num_keywords"]),
                                         jnp.float32)

    fwd = jax.jit(lambda p, ids, m, kw:
                  pubmedbert_classifier_forward(p, ids, m, kw, cfg))
    logits = fwd(params, input_ids, attention_mask, keyword_features)
    logits = jax.block_until_ready(logits)

    assert logits.shape == (B, cfg["num_labels"])
    assert logits.dtype == jnp.float32
    assert bool(jnp.all(jnp.isfinite(logits)))
    print("KERNEL_OK")
</pallas_src>

<mosaic_0001>
module attributes {stable_mosaic.version = 11 : i64} {
  func.func @_k(%arg0: i32, %arg1: memref<8x128xf32, #tpu.memory_space<vmem>>, %arg2: memref<8x128xf32, #tpu.memory_space<vmem>>, %arg3: memref<8x128xf32, #tpu.memory_space<vmem>>) attributes {dimension_semantics = [#tpu.dimension_semantics<arbitrary>], iteration_bounds = array<i64: 2>, scalar_prefetch = 0 : i64, scratch_operands = 0 : i64, tpu.core_type = #tpu.core_type<tc>, window_params = [{transform_indices = @transform_0, window_bounds = array<i64: 8, 128>}, {pipeline_mode = #tpu.pipeline_mode<synchronous>, transform_indices = @transform_1, window_bounds = array<i64: 8, 128>}, {transform_indices = @transform_2, window_bounds = array<i64: 8, 128>}]} {
    %c0 = arith.constant 0 : index
    %c0_0 = arith.constant 0 : index
    %0 = vector.load %arg1[%c0, %c0_0] : memref<8x128xf32, #tpu.memory_space<vmem>>, vector<8x128xf32>
    %c0_1 = arith.constant 0 : index
    %c0_2 = arith.constant 0 : index
    %1 = vector.load %arg2[%c0_1, %c0_2] : memref<8x128xf32, #tpu.memory_space<vmem>>, vector<8x128xf32>
    %2 = arith.addf %0, %1 : vector<8x128xf32>
    %c0_3 = arith.constant 0 : index
    %c0_4 = arith.constant 0 : index
    %3 = vector.load %arg3[%c0_3, %c0_4] : memref<8x128xf32, #tpu.memory_space<vmem>>, vector<8x128xf32>
    tpu.vector_store %arg3[%c0_3, %c0_4], %2 {strides = array<i32>} : memref<8x128xf32, #tpu.memory_space<vmem>>, vector<8x128xf32>,
    return
  }
  func.func @transform_0(%arg0: i32) -> (i32, i32) {
    %c0_i32 = arith.constant 0 : i32
    %c0_i32_0 = arith.constant 0 : i32
    return %arg0, %c0_i32 : i32, i32
  }
  func.func @transform_1(%arg0: i32) -> (i32, i32) {
    %c0_i32 = arith.constant 0 : i32
    %c0_i32_0 = arith.constant 0 : i32
    %c0_i32_1 = arith.constant 0 : i32
    return %c0_i32, %c0_i32_0 : i32, i32
  }
  func.func @transform_2(%arg0: i32) -> (i32, i32) {
    %c0_i32 = arith.constant 0 : i32
    %c0_i32_0 = arith.constant 0 : i32
    return %arg0, %c0_i32 : i32, i32
  }
}

module attributes {stable_mosaic.version = 11 : i64} {
  func.func @_layernorm_kernel(%arg0: i32, %arg1: memref<16x32xbf16, #tpu.memory_space<vmem>>, %arg2: memref<1x32xf32, #tpu.memory_space<vmem>>, %arg3: memref<1x32xf32, #tpu.memory_space<vmem>>, %arg4: memref<16x32xbf16, #tpu.memory_space<vmem>>) attributes {dimension_semantics = [#tpu.dimension_semantics<parallel>], iteration_bounds = array<i64: 1>, scalar_prefetch = 0 : i64, scratch_operands = 0 : i64, tpu.core_type = #tpu.core_type<tc>, window_params = [{transform_indices = @transform_0, window_bounds = array<i64: 16, 32>}, {pipeline_mode = #tpu.pipeline_mode<synchronous>, transform_indices = @transform_1, window_bounds = array<i64: 1, 32>}, {pipeline_mode = #tpu.pipeline_mode<synchronous>, transform_indices = @transform_2, window_bounds = array<i64: 1, 32>}, {transform_indices = @transform_3, window_bounds = array<i64: 16, 32>}]} {
    %c0 = arith.constant 0 : index
    %c0_0 = arith.constant 0 : index
    %0 = vector.load %arg1[%c0, %c0_0] : memref<16x32xbf16, #tpu.memory_space<vmem>>, vector<16x32xbf16>
    %1 = arith.extf %0 : vector<16x32xbf16> to vector<16x32xf32>
    %cst = arith.constant dense<0.000000e+00> : vector<16xf32>
    %2 = vector.multi_reduction <add>, %1, %cst [1] : vector<16x32xf32> to vector<16xf32>
    %3 = vector.shape_cast %2 : vector<16xf32> to vector<16x1xf32>
    %cst_1 = arith.constant 3.200000e+01 : f32
    %4 = vector.broadcast %cst_1 : f32 to vector<16x1xf32>
    %5 = arith.divf %3, %4 : vector<16x1xf32>
    %6 = vector.broadcast %5 : vector<16x1xf32> to vector<16x32xf32>
    %7 = arith.subf %1, %6 : vector<16x32xf32>
    %8 = vector.broadcast %5 : vector<16x1xf32> to vector<16x32xf32>
    %9 = arith.subf %1, %8 : vector<16x32xf32>
    %10 = arith.mulf %7, %9 : vector<16x32xf32>
    %cst_2 = arith.constant dense<0.000000e+00> : vector<16xf32>
    %11 = vector.multi_reduction <add>, %10, %cst_2 [1] : vector<16x32xf32> to vector<16xf32>
    %12 = vector.shape_cast %11 : vector<16xf32> to vector<16x1xf32>
    %cst_3 = arith.constant 3.200000e+01 : f32
    %13 = vector.broadcast %cst_3 : f32 to vector<16x1xf32>
    %14 = arith.divf %12, %13 : vector<16x1xf32>
    %15 = vector.broadcast %5 : vector<16x1xf32> to vector<16x32xf32>
    %16 = arith.subf %1, %15 : vector<16x32xf32>
    %cst_4 = arith.constant 9.99999996E-13 : f32
    %17 = vector.broadcast %cst_4 : f32 to vector<16x1xf32>
    %18 = arith.addf %14, %17 : vector<16x1xf32>
    %19 = math.rsqrt %18 : vector<16x1xf32>
    %20 = vector.broadcast %19 : vector<16x1xf32> to vector<16x32xf32>
    %21 = arith.mulf %16, %20 : vector<16x32xf32>
    %c0_5 = arith.constant 0 : index
    %c0_6 = arith.constant 0 : index
    %22 = vector.load %arg2[%c0_5, %c0_6] : memref<1x32xf32, #tpu.memory_space<vmem>>, vector<1x32xf32>
    %23 = vector.broadcast %22 : vector<1x32xf32> to vector<16x32xf32>
    %24 = arith.mulf %21, %23 : vector<16x32xf32>
    %c0_7 = arith.constant 0 : index
    %c0_8 = arith.constant 0 : index
    %25 = vector.load %arg3[%c0_7, %c0_8] : memref<1x32xf32, #tpu.memory_space<vmem>>, vector<1x32xf32>
    %26 = vector.broadcast %25 : vector<1x32xf32> to vector<16x32xf32>
    %27 = arith.addf %24, %26 : vector<16x32xf32>
    %28 = arith.truncf %27 : vector<16x32xf32> to vector<16x32xbf16>
    %c0_9 = arith.constant 0 : index
    %c0_10 = arith.constant 0 : index
    %29 = vector.load %arg4[%c0_9, %c0_10] : memref<16x32xbf16, #tpu.memory_space<vmem>>, vector<16x32xbf16>
    tpu.vector_store %arg4[%c0_9, %c0_10], %28 {strides = array<i32>} : memref<16x32xbf16, #tpu.memory_space<vmem>>, vector<16x32xbf16>,
    return
  }
  func.func @transform_0(%arg0: i32) -> (i32, i32) {
    %c0_i32 = arith.constant 0 : i32
    %c0_i32_0 = arith.constant 0 : i32
    return %arg0, %c0_i32 : i32, i32
  }
  func.func @transform_1(%arg0: i32) -> (i32, i32) {
    %c0_i32 = arith.constant 0 : i32
    %c0_i32_0 = arith.constant 0 : i32
    %c0_i32_1 = arith.constant 0 : i32
    return %c0_i32, %c0_i32_0 : i32, i32
  }
  func.func @transform_2(%arg0: i32) -> (i32, i32) {
    %c0_i32 = arith.constant 0 : i32
    %c0_i32_0 = arith.constant 0 : i32
    %c0_i32_1 = arith.constant 0 : i32
    return %c0_i32, %c0_i32_0 : i32, i32
  }
  func.func @transform_3(%arg0: i32) -> (i32, i32) {
    %c0_i32 = arith.constant 0 : i32
    %c0_i32_0 = arith.constant 0 : i32
    return %arg0, %c0_i32 : i32, i32
  }
}

module attributes {stable_mosaic.version = 11 : i64} {
  func.func @_qkv_kernel(%arg0: i32, %arg1: memref<16x32xbf16, #tpu.memory_space<vmem>>, %arg2: memref<32x96xbf16, #tpu.memory_space<vmem>>, %arg3: memref<1x96xf32, #tpu.memory_space<vmem>>, %arg4: memref<16x32xbf16, #tpu.memory_space<vmem>>, %arg5: memref<16x32xbf16, #tpu.memory_space<vmem>>, %arg6: memref<16x32xbf16, #tpu.memory_space<vmem>>) attributes {dimension_semantics = [#tpu.dimension_semantics<parallel>], iteration_bounds = array<i64: 1>, scalar_prefetch = 0 : i64, scratch_operands = 0 : i64, tpu.core_type = #tpu.core_type<tc>, window_params = [{transform_indices = @transform_0, window_bounds = array<i64: 16, 32>}, {pipeline_mode = #tpu.pipeline_mode<synchronous>, transform_indices = @transform_1, window_bounds = array<i64: 32, 96>}, {pipeline_mode = #tpu.pipeline_mode<synchronous>, transform_indices = @transform_2, window_bounds = array<i64: 1, 96>}, {transform_indices = @transform_3, window_bounds = array<i64: 16, 32>}, {transform_indices = @transform_4, window_bounds = array<i64: 16, 32>}, {transform_indices = @transform_5, window_bounds = array<i64: 16, 32>}]} {
    %c0 = arith.constant 0 : index
    %c0_0 = arith.constant 0 : index
    %0 = vector.load %arg1[%c0, %c0_0] : memref<16x32xbf16, #tpu.memory_space<vmem>>, vector<16x32xbf16>
    %c0_1 = arith.constant 0 : index
    %c0_2 = arith.constant 0 : index
    %1 = vector.load %arg2[%c0_1, %c0_2] : memref<32x96xbf16, #tpu.memory_space<vmem>>, vector<32x96xbf16>
    %cst = arith.constant dense<0.000000e+00> : vector<16x96xf32>
    %2 = tpu.matmul %0, %1, %cst {dimension_numbers = #tpu.dot_dimension_numbers<[1], [0], [0], [1], [0, 0, 1, 1], [], []>} : vector<16x32xbf16>, vector<32x96xbf16>, vector<16x96xf32> -> vector<16x96xf32>
    %c0_3 = arith.constant 0 : index
    %c0_4 = arith.constant 0 : index
    %3 = vector.load %arg3[%c0_3, %c0_4] : memref<1x96xf32, #tpu.memory_space<vmem>>, vector<1x96xf32>
    %4 = vector.broadcast %3 : vector<1x96xf32> to vector<16x96xf32>
    %5 = arith.addf %2, %4 : vector<16x96xf32>
    %6 = vector.extract_strided_slice %5 {offsets = [0, 0], sizes = [16, 32], strides = [1, 1]} : vector<16x96xf32> to vector<16x32xf32>
    %7 = arith.truncf %6 : vector<16x32xf32> to vector<16x32xbf16>
    %c0_5 = arith.constant 0 : index
    %c0_6 = arith.constant 0 : index
    %8 = vector.load %arg4[%c0_5, %c0_6] : memref<16x32xbf16, #tpu.memory_space<vmem>>, vector<16x32xbf16>
    tpu.vector_store %arg4[%c0_5, %c0_6], %7 {strides = array<i32>} : memref<16x32xbf16, #tpu.memory_space<vmem>>, vector<16x32xbf16>,
    %9 = vector.extract_strided_slice %5 {offsets = [0, 32], sizes = [16, 32], strides = [1, 1]} : vector<16x96xf32> to vector<16x32xf32>
    %10 = arith.truncf %9 : vector<16x32xf32> to vector<16x32xbf16>
    %c0_7 = arith.constant 0 : index
    %c0_8 = arith.constant 0 : index
    %11 = vector.load %arg5[%c0_7, %c0_8] : memref<16x32xbf16, #tpu.memory_space<vmem>>, vector<16x32xbf16>
    tpu.vector_store %arg5[%c0_7, %c0_8], %10 {strides = array<i32>} : memref<16x32xbf16, #tpu.memory_space<vmem>>, vector<16x32xbf16>,
    %12 = vector.extract_strided_slice %5 {offsets = [0, 64], sizes = [16, 32], strides = [1, 1]} : vector<16x96xf32> to vector<16x32xf32>
    %13 = arith.truncf %12 : vector<16x32xf32> to vector<16x32xbf16>
    %c0_9 = arith.constant 0 : index
    %c0_10 = arith.constant 0 : index
    %14 = vector.load %arg6[%c0_9, %c0_10] : memref<16x32xbf16, #tpu.memory_space<vmem>>, vector<16x32xbf16>
    tpu.vector_store %arg6[%c0_9, %c0_10], %13 {strides = array<i32>} : memref<16x32xbf16, #tpu.memory_space<vmem>>, vector<16x32xbf16>,
    return
  }
  func.func @transform_0(%arg0: i32) -> (i32, i32) {
    %c0_i32 = arith.constant 0 : i32
    %c0_i32_0 = arith.constant 0 : i32
    return %arg0, %c0_i32 : i32, i32
  }
  func.func @transform_1(%arg0: i32) -> (i32, i32) {
    %c0_i32 = arith.constant 0 : i32
    %c0_i32_0 = arith.constant 0 : i32
    %c0_i32_1 = arith.constant 0 : i32
    return %c0_i32, %c0_i32_0 : i32, i32
  }
  func.func @transform_2(%arg0: i32) -> (i32, i32) {
    %c0_i32 = arith.constant 0 : i32
    %c0_i32_0 = arith.constant 0 : i32
    %c0_i32_1 = arith.constant 0 : i32
    return %c0_i32, %c0_i32_0 : i32, i32
  }
  func.func @transform_3(%arg0: i32) -> (i32, i32) {
    %c0_i32 = arith.constant 0 : i32
    %c0_i32_0 = arith.constant 0 : i32
    return %arg0, %c0_i32 : i32, i32
  }
  func.func @transform_4(%arg0: i32) -> (i32, i32) {
    %c0_i32 = arith.constant 0 : i32
    %c0_i32_0 = arith.constant 0 : i32
    return %arg0, %c0_i32 : i32, i32
  }
  func.func @transform_5(%arg0: i32) -> (i32, i32) {
    %c0_i32 = arith.constant 0 : i32
    %c0_i32_0 = arith.constant 0 : i32
    return %arg0, %c0_i32 : i32, i32
  }
}

module attributes {stable_mosaic.version = 11 : i64} {
  func.func @_attn_out_ln_kernel(%arg0: i32, %arg1: i32, %arg2: memref<1x8x32xbf16, #tpu.memory_space<vmem>>, %arg3: memref<1x8x32xbf16, #tpu.memory_space<vmem>>, %arg4: memref<1x8x32xbf16, #tpu.memory_space<vmem>>, %arg5: memref<1x1x8xf32, #tpu.memory_space<vmem>>, %arg6: memref<1x8x32xbf16, #tpu.memory_space<vmem>>, %arg7: memref<32x32xbf16, #tpu.memory_space<vmem>>, %arg8: memref<1x32xf32, #tpu.memory_space<vmem>>, %arg9: memref<1x32xf32, #tpu.memory_space<vmem>>, %arg10: memref<1x32xf32, #tpu.memory_space<vmem>>, %arg11: memref<1x8x32xbf16, #tpu.memory_space<vmem>>) attributes {dimension_semantics = [#tpu.dimension_semantics<parallel>, #tpu.dimension_semantics<parallel>], iteration_bounds = array<i64: 2, 1>, scalar_prefetch = 0 : i64, scratch_operands = 0 : i64, tpu.core_type = #tpu.core_type<tc>, window_params = [{transform_indices = @transform_0, window_bounds = array<i64: 1, 8, 32>}, {transform_indices = @transform_1, window_bounds = array<i64: 1, 8, 32>}, {transform_indices = @transform_2, window_bounds = array<i64: 1, 8, 32>}, {transform_indices = @transform_3, window_bounds = array<i64: 1, 1, 8>}, {transform_indices = @transform_4, window_bounds = array<i64: 1, 8, 32>}, {pipeline_mode = #tpu.pipeline_mode<synchronous>, transform_indices = @transform_5, window_bounds = array<i64: 32, 32>}, {pipeline_mode = #tpu.pipeline_mode<synchronous>, transform_indices = @transform_6, window_bounds = array<i64: 1, 32>}, {pipeline_mode = #tpu.pipeline_mode<synchronous>, transform_indices = @transform_7, window_bounds = array<i64: 1, 32>}, {pipeline_mode = #tpu.pipeline_mode<synchronous>, transform_indices = @transform_8, window_bounds = array<i64: 1, 32>}, {transform_indices = @transform_9, window_bounds = array<i64: 1, 8, 32>}]} {
    %c0 = arith.constant 0 : index
    %c0_0 = arith.constant 0 : index
    %c0_1 = arith.constant 0 : index
    %0 = vector.load %arg5[%c0, %c0_0, %c0_1] : memref<1x1x8xf32, #tpu.memory_space<vmem>>, vector<1x1x8xf32>
    %1 = vector.shape_cast %0 : vector<1x1x8xf32> to vector<1x8xf32>
    %c0_2 = arith.constant 0 : index
    %c0_3 = arith.constant 0 : index
    %c0_4 = arith.constant 0 : index
    %2 = vector.load %arg6[%c0_2, %c0_3, %c0_4] : memref<1x8x32xbf16, #tpu.memory_space<vmem>>, vector<1x8x32xbf16>
    %3 = vector.shape_cast %2 : vector<1x8x32xbf16> to vector<8x32xbf16>
    %4 = arith.extf %3 : vector<8x32xbf16> to vector<8x32xf32>
    %c0_5 = arith.constant 0 : index
    %c0_6 = arith.constant 0 : index
    %5 = vector.load %arg8[%c0_5, %c0_6] : memref<1x32xf32, #tpu.memory_space<vmem>>, vector<1x32xf32>
    %6 = vector.broadcast %5 : vector<1x32xf32> to vector<8x32xf32>
    %7 = arith.addf %4, %6 : vector<8x32xf32>
    %c0_7 = arith.constant 0 : index
    %c0_8 = arith.constant 0 : index
    %c0_9 = arith.constant 0 : index
    %8 = vector.load %arg2[%c0_7, %c0_8, %c0_9] : memref<1x8x32xbf16, #tpu.memory_space<vmem>>, vector<1x8x16xbf16>
    %9 = vector.shape_cast %8 : vector<1x8x16xbf16> to vector<8x16xbf16>
    %c0_10 = arith.constant 0 : index
    %c0_11 = arith.constant 0 : index
    %c0_12 = arith.constant 0 : index
    %10 = vector.load %arg3[%c0_10, %c0_11, %c0_12] : memref<1x8x32xbf16, #tpu.memory_space<vmem>>, vector<1x8x16xbf16>
    %11 = vector.shape_cast %10 : vector<1x8x16xbf16> to vector<8x16xbf16>
    %cst = arith.constant dense<0.000000e+00> : vector<8x8xf32>
    %12 = tpu.matmul %9, %11, %cst {dimension_numbers = #tpu.dot_dimension_numbers<[1], [1], [0], [0], [0, 0, 1, 0], [], []>} : vector<8x16xbf16>, vector<8x16xbf16>, vector<8x8xf32> -> vector<8x8xf32>
    %cst_13 = arith.constant 2.500000e-01 : f32
    %13 = vector.broadcast %cst_13 : f32 to vector<8x8xf32>
    %14 = arith.mulf %12, %13 : vector<8x8xf32>
    %15 = vector.broadcast %1 : vector<1x8xf32> to vector<8x8xf32>
    %16 = arith.addf %14, %15 : vector<8x8xf32>
    %cst_14 = arith.constant dense<0xFF800000> : vector<8xf32>
    %17 = vector.multi_reduction <maximumf>, %16, %cst_14 [1] : vector<8x8xf32> to vector<8xf32>
    %18 = vector.shape_cast %17 : vector<8xf32> to vector<8x1xf32>
    %19 = vector.broadcast %18 : vector<8x1xf32> to vector<8x8xf32>
    %20 = arith.subf %16, %19 : vector<8x8xf32>
    %21 = math.exp %20 : vector<8x8xf32>
    %cst_15 = arith.constant dense<0.000000e+00> : vector<8xf32>
    %22 = vector.multi_reduction <add>, %21, %cst_15 [1] : vector<8x8xf32> to vector<8xf32>
    %23 = vector.shape_cast %22 : vector<8xf32> to vector<8x1xf32>
    %24 = tpu.reciprocal %23 {approx = true} : vector<8x1xf32> -> vector<8x1xf32>
    %25 = vector.broadcast %24 : vector<8x1xf32> to vector<8x8xf32>
    %26 = arith.mulf %21, %25 : vector<8x8xf32>
    %27 = arith.truncf %26 : vector<8x8xf32> to vector<8x8xbf16>
    %c0_16 = arith.constant 0 : index
    %c0_17 = arith.constant 0 : index
    %c0_18 = arith.constant 0 : index
    %28 = vector.load %arg4[%c0_16, %c0_17, %c0_18] : memref<1x8x32xbf16, #tpu.memory_space<vmem>>, vector<1x8x16xbf16>
    %29 = vector.shape_cast %28 : vector<1x8x16xbf16> to vector<8x16xbf16>
    %cst_19 = arith.constant dense<0.000000e+00> : vector<8x16xf32>
    %30 = tpu.matmul %27, %29, %cst_19 {dimension_numbers = #tpu.dot_dimension_numbers<[1], [0], [0], [1], [0, 0, 1, 1], [], []>} : vector<8x8xbf16>, vector<8x16xbf16>, vector<8x16xf32> -> vector<8x16xf32>
    %31 = arith.truncf %30 : vector<8x16xf32> to vector<8x16xbf16>
    %c0_20 = arith.constant 0 : index
    %c0_21 = arith.constant 0 : index
    %32 = vector.load %arg7[%c0_20, %c0_21] : memref<32x32xbf16, #tpu.memory_space<vmem>>, vector<16x32xbf16>
    %cst_22 = arith.constant dense<0.000000e+00> : vector<8x32xf32>
    %33 = tpu.matmul %31, %32, %cst_22 {dimension_numbers = #tpu.dot_dimension_numbers<[1], [0], [0], [1], [0, 0, 1, 1], [], []>} : vector<8x16xbf16>, vector<16x32xbf16>, vector<8x32xf32> -> vector<8x32xf32>
    %34 = arith.addf %7, %33 : vector<8x32xf32>
    %c0_23 = arith.constant 0 : index
    %c0_24 = arith.constant 0 : index
    %c16 = arith.constant 16 : index
    %35 = vector.load %arg2[%c0_23, %c0_24, %c16] : memref<1x8x32xbf16, #tpu.memory_space<vmem>>, vector<1x8x16xbf16>
    %36 = vector.shape_cast %35 : vector<1x8x16xbf16> to vector<8x16xbf16>
    %c0_25 = arith.constant 0 : index
    %c0_26 = arith.constant 0 : index
    %c16_27 = arith.constant 16 : index
    %37 = vector.load %arg3[%c0_25, %c0_26, %c16_27] : memref<1x8x32xbf16, #tpu.memory_space<vmem>>, vector<1x8x16xbf16>
    %38 = vector.shape_cast %37 : vector<1x8x16xbf16> to vector<8x16xbf16>
    %cst_28 = arith.constant dense<0.000000e+00> : vector<8x8xf32>
    %39 = tpu.matmul %36, %38, %cst_28 {dimension_numbers = #tpu.dot_dimension_numbers<[1], [1], [0], [0], [0, 0, 1, 0], [], []>} : vector<8x16xbf16>, vector<8x16xbf16>, vector<8x8xf32> -> vector<8x8xf32>
    %cst_29 = arith.constant 2.500000e-01 : f32
    %40 = vector.broadcast %cst_29 : f32 to vector<8x8xf32>
    %41 = arith.mulf %39, %40 : vector<8x8xf32>
    %42 = vector.broadcast %1 : vector<1x8xf32> to vector<8x8xf32>
    %43 = arith.addf %41, %42 : vector<8x8xf32>
    %cst_30 = arith.constant dense<0xFF800000> : vector<8xf32>
    %44 = vector.multi_reduction <maximumf>, %43, %cst_30 [1] : vector<8x8xf32> to vector<8xf32>
    %45 = vector.shape_cast %44 : vector<8xf32> to vector<8x1xf32>
    %46 = vector.broadcast %45 : vector<8x1xf32> to vector<8x8xf32>
    %47 = arith.subf %43, %46 : vector<8x8xf32>
    %48 = math.exp %47 : vector<8x8xf32>
    %cst_31 = arith.constant dense<0.000000e+00> : vector<8xf32>
    %49 = vector.multi_reduction <add>, %48, %cst_31 [1] : vector<8x8xf32> to vector<8xf32>
    %50 = vector.shape_cast %49 : vector<8xf32> to vector<8x1xf32>
    %51 = tpu.reciprocal %50 {approx = true} : vector<8x1xf32> -> vector<8x1xf32>
    %52 = vector.broadcast %51 : vector<8x1xf32> to vector<8x8xf32>
    %53 = arith.mulf %48, %52 : vector<8x8xf32>
    %54 = arith.truncf %53 : vector<8x8xf32> to vector<8x8xbf16>
    %c0_32 = arith.constant 0 : index
    %c0_33 = arith.constant 0 : index
    %c16_34 = arith.constant 16 : index
    %55 = vector.load %arg4[%c0_32, %c0_33, %c16_34] : memref<1x8x32xbf16, #tpu.memory_space<vmem>>, vector<1x8x16xbf16>
    %56 = vector.shape_cast %55 : vector<1x8x16xbf16> to vector<8x16xbf16>
    %cst_35 = arith.constant dense<0.000000e+00> : vector<8x16xf32>
    %57 = tpu.matmul %54, %56, %cst_35 {dimension_numbers = #tpu.dot_dimension_numbers<[1], [0], [0], [1], [0, 0, 1, 1], [], []>} : vector<8x8xbf16>, vector<8x16xbf16>, vector<8x16xf32> -> vector<8x16xf32>
    %58 = arith.truncf %57 : vector<8x16xf32> to vector<8x16xbf16>
    %c16_36 = arith.constant 16 : index
    %c0_37 = arith.constant 0 : index
    %59 = vector.load %arg7[%c16_36, %c0_37] : memref<32x32xbf16, #tpu.memory_space<vmem>>, vector<16x32xbf16>
    %cst_38 = arith.constant dense<0.000000e+00> : vector<8x32xf32>
    %60 = tpu.matmul %58, %59, %cst_38 {dimension_numbers = #tpu.dot_dimension_numbers<[1], [0], [0], [1], [0, 0, 1, 1], [], []>} : vector<8x16xbf16>, vector<16x32xbf16>, vector<8x32xf32> -> vector<8x32xf32>
    %61 = arith.addf %34, %60 : vector<8x32xf32>
    %cst_39 = arith.constant dense<0.000000e+00> : vector<8xf32>
    %62 = vector.multi_reduction <add>, %61, %cst_39 [1] : vector<8x32xf32> to vector<8xf32>
    %63 = vector.shape_cast %62 : vector<8xf32> to vector<8x1xf32>
    %cst_40 = arith.constant 3.200000e+01 : f32
    %64 = vector.broadcast %cst_40 : f32 to vector<8x1xf32>
    %65 = arith.divf %63, %64 : vector<8x1xf32>
    %66 = vector.broadcast %65 : vector<8x1xf32> to vector<8x32xf32>
    %67 = arith.subf %61, %66 : vector<8x32xf32>
    %68 = vector.broadcast %65 : vector<8x1xf32> to vector<8x32xf32>
    %69 = arith.subf %61, %68 : vector<8x32xf32>
    %70 = arith.mulf %67, %69 : vector<8x32xf32>
    %cst_41 = arith.constant dense<0.000000e+00> : vector<8xf32>
    %71 = vector.multi_reduction <add>, %70, %cst_41 [1] : vector<8x32xf32> to vector<8xf32>
    %72 = vector.shape_cast %71 : vector<8xf32> to vector<8x1xf32>
    %cst_42 = arith.constant 3.200000e+01 : f32
    %73 = vector.broadcast %cst_42 : f32 to vector<8x1xf32>
    %74 = arith.divf %72, %73 : vector<8x1xf32>
    %75 = vector.broadcast %65 : vector<8x1xf32> to vector<8x32xf32>
    %76 = arith.subf %61, %75 : vector<8x32xf32>
    %cst_43 = arith.constant 9.99999996E-13 : f32
    %77 = vector.broadcast %cst_43 : f32 to vector<8x1xf32>
    %78 = arith.addf %74, %77 : vector<8x1xf32>
    %79 = math.rsqrt %78 : vector<8x1xf32>
    %80 = vector.broadcast %79 : vector<8x1xf32> to vector<8x32xf32>
    %81 = arith.mulf %76, %80 : vector<8x32xf32>
    %c0_44 = arith.constant 0 : index
    %c0_45 = arith.constant 0 : index
    %82 = vector.load %arg9[%c0_44, %c0_45] : memref<1x32xf32, #tpu.memory_space<vmem>>, vector<1x32xf32>
    %83 = vector.broadcast %82 : vector<1x32xf32> to vector<8x32xf32>
    %84 = arith.mulf %81, %83 : vector<8x32xf32>
    %c0_46 = arith.constant 0 : index
    %c0_47 = arith.constant 0 : index
    %85 = vector.load %arg10[%c0_46, %c0_47] : memref<1x32xf32, #tpu.memory_space<vmem>>, vector<1x32xf32>
    %86 = vector.broadcast %85 : vector<1x32xf32> to vector<8x32xf32>
    %87 = arith.addf %84, %86 : vector<8x32xf32>
    %88 = arith.truncf %87 : vector<8x32xf32> to vector<8x32xbf16>
    %c0_48 = arith.constant 0 : index
    %c0_49 = arith.constant 0 : index
    %c0_50 = arith.constant 0 : index
    %89 = vector.load %arg11[%c0_48, %c0_49, %c0_50] : memref<1x8x32xbf16, #tpu.memory_space<vmem>>, vector<1x8x32xbf16>
    %90 = vector.shape_cast %89 : vector<1x8x32xbf16> to vector<8x32xbf16>
    %91 = vector.shape_cast %88 : vector<8x32xbf16> to vector<1x8x32xbf16>
    tpu.vector_store %arg11[%c0_48, %c0_49, %c0_50], %91 {strides = array<i32>} : memref<1x8x32xbf16, #tpu.memory_space<vmem>>, vector<1x8x32xbf16>,
    return
  }
  func.func @transform_0(%arg0: i32, %arg1: i32) -> (i32, i32, i32) {
    %c0_i32 = arith.constant 0 : i32
    %c0_i32_0 = arith.constant 0 : i32
    return %arg0, %arg1, %c0_i32 : i32, i32, i32
  }
  func.func @transform_1(%arg0: i32, %arg1: i32) -> (i32, i32, i32) {
    %c0_i32 = arith.constant 0 : i32
    %c0_i32_0 = arith.constant 0 : i32
    %c0_i32_1 = arith.constant 0 : i32
    return %arg0, %c0_i32, %c0_i32_0 : i32, i32, i32
  }
  func.func @transform_2(%arg0: i32, %arg1: i32) -> (i32, i32, i32) {
    %c0_i32 = arith.constant 0 : i32
    %c0_i32_0 = arith.constant 0 : i32
    %c0_i32_1 = arith.constant 0 : i32
    return %arg0, %c0_i32, %c0_i32_0 : i32, i32, i32
  }
  func.func @transform_3(%arg0: i32, %arg1: i32) -> (i32, i32, i32) {
    %c0_i32 = arith.constant 0 : i32
    %c0_i32_0 = arith.constant 0 : i32
    %c0_i32_1 = arith.constant 0 : i32
    return %arg0, %c0_i32, %c0_i32_0 : i32, i32, i32
  }
  func.func @transform_4(%arg0: i32, %arg1: i32) -> (i32, i32, i32) {
    %c0_i32 = arith.constant 0 : i32
    %c0_i32_0 = arith.constant 0 : i32
    return %arg0, %arg1, %c0_i32 : i32, i32, i32
  }
  func.func @transform_5(%arg0: i32, %arg1: i32) -> (i32, i32) {
    %c0_i32 = arith.constant 0 : i32
    %c0_i32_0 = arith.constant 0 : i32
    %c0_i32_1 = arith.constant 0 : i32
    return %c0_i32, %c0_i32_0 : i32, i32
  }
  func.func @transform_6(%arg0: i32, %arg1: i32) -> (i32, i32) {
    %c0_i32 = arith.constant 0 : i32
    %c0_i32_0 = arith.constant 0 : i32
    %c0_i32_1 = arith.constant 0 : i32
    return %c0_i32, %c0_i32_0 : i32, i32
  }
  func.func @transform_7(%arg0: i32, %arg1: i32) -> (i32, i32) {
    %c0_i32 = arith.constant 0 : i32
    %c0_i32_0 = arith.constant 0 : i32
    %c0_i32_1 = arith.constant 0 : i32
    return %c0_i32, %c0_i32_0 : i32, i32
  }
  func.func @transform_8(%arg0: i32, %arg1: i32) -> (i32, i32) {
    %c0_i32 = arith.constant 0 : i32
    %c0_i32_0 = arith.constant 0 : i32
    %c0_i32_1 = arith.constant 0 : i32
    return %c0_i32, %c0_i32_0 : i32, i32
  }
  func.func @transform_9(%arg0: i32, %arg1: i32) -> (i32, i32, i32) {
    %c0_i32 = arith.constant 0 : i32
    %c0_i32_0 = arith.constant 0 : i32
    return %arg0, %arg1, %c0_i32 : i32, i32, i32
  }
}

module attributes {stable_mosaic.version = 11 : i64} {
  func.func @_ffn_residual_ln_kernel(%arg0: i32, %arg1: memref<16x32xbf16, #tpu.memory_space<vmem>>, %arg2: memref<32x64xbf16, #tpu.memory_space<vmem>>, %arg3: memref<1x64xf32, #tpu.memory_space<vmem>>, %arg4: memref<64x32xbf16, #tpu.memory_space<vmem>>, %arg5: memref<1x32xf32, #tpu.memory_space<vmem>>, %arg6: memref<1x32xf32, #tpu.memory_space<vmem>>, %arg7: memref<1x32xf32, #tpu.memory_space<vmem>>, %arg8: memref<16x32xbf16, #tpu.memory_space<vmem>>) attributes {dimension_semantics = [#tpu.dimension_semantics<parallel>], iteration_bounds = array<i64: 1>, scalar_prefetch = 0 : i64, scratch_operands = 0 : i64, tpu.core_type = #tpu.core_type<tc>, window_params = [{transform_indices = @transform_0, window_bounds = array<i64: 16, 32>}, {pipeline_mode = #tpu.pipeline_mode<synchronous>, transform_indices = @transform_1, window_bounds = array<i64: 32, 64>}, {pipeline_mode = #tpu.pipeline_mode<synchronous>, transform_indices = @transform_2, window_bounds = array<i64: 1, 64>}, {pipeline_mode = #tpu.pipeline_mode<synchronous>, transform_indices = @transform_3, window_bounds = array<i64: 64, 32>}, {pipeline_mode = #tpu.pipeline_mode<synchronous>, transform_indices = @transform_4, window_bounds = array<i64: 1, 32>}, {pipeline_mode = #tpu.pipeline_mode<synchronous>, transform_indices = @transform_5, window_bounds = array<i64: 1, 32>}, {pipeline_mode = #tpu.pipeline_mode<synchronous>, transform_indices = @transform_6, window_bounds = array<i64: 1, 32>}, {transform_indices = @transform_7, window_bounds = array<i64: 16, 32>}]} {
    %c0 = arith.constant 0 : index
    %c0_0 = arith.constant 0 : index
    %0 = vector.load %arg1[%c0, %c0_0] : memref<16x32xbf16, #tpu.memory_space<vmem>>, vector<16x32xbf16>
    %c0_1 = arith.constant 0 : index
    %c0_2 = arith.constant 0 : index
    %1 = vector.load %arg2[%c0_1, %c0_2] : memref<32x64xbf16, #tpu.memory_space<vmem>>, vector<32x64xbf16>
    %cst = arith.constant dense<0.000000e+00> : vector<16x64xf32>
    %2 = tpu.matmul %0, %1, %cst {dimension_numbers = #tpu.dot_dimension_numbers<[1], [0], [0], [1], [0, 0, 1, 1], [], []>} : vector<16x32xbf16>, vector<32x64xbf16>, vector<16x64xf32> -> vector<16x64xf32>
    %c0_3 = arith.constant 0 : index
    %c0_4 = arith.constant 0 : index
    %3 = vector.load %arg3[%c0_3, %c0_4] : memref<1x64xf32, #tpu.memory_space<vmem>>, vector<1x64xf32>
    %4 = vector.broadcast %3 : vector<1x64xf32> to vector<16x64xf32>
    %5 = arith.addf %2, %4 : vector<16x64xf32>
    %6 = arith.mulf %5, %5 : vector<16x64xf32>
    %7 = arith.mulf %5, %6 : vector<16x64xf32>
    %cst_5 = arith.constant 4.471500e-02 : f32
    %8 = vector.broadcast %cst_5 : f32 to vector<16x64xf32>
    %9 = arith.mulf %8, %7 : vector<16x64xf32>
    %10 = arith.addf %5, %9 : vector<16x64xf32>
    %cst_6 = arith.constant 0.797884583 : f32
    %11 = vector.broadcast %cst_6 : f32 to vector<16x64xf32>
    %12 = arith.mulf %11, %10 : vector<16x64xf32>
    %13 = math.tanh %12 : vector<16x64xf32>
    %cst_7 = arith.constant 1.000000e+00 : f32
    %14 = vector.broadcast %cst_7 : f32 to vector<16x64xf32>
    %15 = arith.addf %14, %13 : vector<16x64xf32>
    %cst_8 = arith.constant 5.000000e-01 : f32
    %16 = vector.broadcast %cst_8 : f32 to vector<16x64xf32>
    %17 = arith.mulf %16, %15 : vector<16x64xf32>
    %18 = arith.mulf %5, %17 : vector<16x64xf32>
    %19 = arith.truncf %18 : vector<16x64xf32> to vector<16x64xbf16>
    %c0_9 = arith.constant 0 : index
    %c0_10 = arith.constant 0 : index
    %20 = vector.load %arg4[%c0_9, %c0_10] : memref<64x32xbf16, #tpu.memory_space<vmem>>, vector<64x32xbf16>
    %cst_11 = arith.constant dense<0.000000e+00> : vector<16x32xf32>
    %21 = tpu.matmul %19, %20, %cst_11 {dimension_numbers = #tpu.dot_dimension_numbers<[1], [0], [0], [1], [0, 0, 1, 1], [], []>} : vector<16x64xbf16>, vector<64x32xbf16>, vector<16x32xf32> -> vector<16x32xf32>
    %c0_12 = arith.constant 0 : index
    %c0_13 = arith.constant 0 : index
    %22 = vector.load %arg5[%c0_12, %c0_13] : memref<1x32xf32, #tpu.memory_space<vmem>>, vector<1x32xf32>
    %23 = vector.broadcast %22 : vector<1x32xf32> to vector<16x32xf32>
    %24 = arith.addf %21, %23 : vector<16x32xf32>
    %25 = arith.extf %0 : vector<16x32xbf16> to vector<16x32xf32>
    %26 = arith.addf %25, %24 : vector<16x32xf32>
    %cst_14 = arith.constant dense<0.000000e+00> : vector<16xf32>
    %27 = vector.multi_reduction <add>, %26, %cst_14 [1] : vector<16x32xf32> to vector<16xf32>
    %28 = vector.shape_cast %27 : vector<16xf32> to vector<16x1xf32>
    %cst_15 = arith.constant 3.200000e+01 : f32
    %29 = vector.broadcast %cst_15 : f32 to vector<16x1xf32>
    %30 = arith.divf %28, %29 : vector<16x1xf32>
    %31 = vector.broadcast %30 : vector<16x1xf32> to vector<16x32xf32>
    %32 = arith.subf %26, %31 : vector<16x32xf32>
    %33 = vector.broadcast %30 : vector<16x1xf32> to vector<16x32xf32>
    %34 = arith.subf %26, %33 : vector<16x32xf32>
    %35 = arith.mulf %32, %34 : vector<16x32xf32>
    %cst_16 = arith.constant dense<0.000000e+00> : vector<16xf32>
    %36 = vector.multi_reduction <add>, %35, %cst_16 [1] : vector<16x32xf32> to vector<16xf32>
    %37 = vector.shape_cast %36 : vector<16xf32> to vector<16x1xf32>
    %cst_17 = arith.constant 3.200000e+01 : f32
    %38 = vector.broadcast %cst_17 : f32 to vector<16x1xf32>
    %39 = arith.divf %37, %38 : vector<16x1xf32>
    %40 = vector.broadcast %30 : vector<16x1xf32> to vector<16x32xf32>
    %41 = arith.subf %26, %40 : vector<16x32xf32>
    %cst_18 = arith.constant 9.99999996E-13 : f32
    %42 = vector.broadcast %cst_18 : f32 to vector<16x1xf32>
    %43 = arith.addf %39, %42 : vector<16x1xf32>
    %44 = math.rsqrt %43 : vector<16x1xf32>
    %45 = vector.broadcast %44 : vector<16x1xf32> to vector<16x32xf32>
    %46 = arith.mulf %41, %45 : vector<16x32xf32>
    %c0_19 = arith.constant 0 : index
    %c0_20 = arith.constant 0 : index
    %47 = vector.load %arg6[%c0_19, %c0_20] : memref<1x32xf32, #tpu.memory_space<vmem>>, vector<1x32xf32>
    %48 = vector.broadcast %47 : vector<1x32xf32> to vector<16x32xf32>
    %49 = arith.mulf %46, %48 : vector<16x32xf32>
    %c0_21 = arith.constant 0 : index
    %c0_22 = arith.constant 0 : index
    %50 = vector.load %arg7[%c0_21, %c0_22] : memref<1x32xf32, #tpu.memory_space<vmem>>, vector<1x32xf32>
    %51 = vector.broadcast %50 : vector<1x32xf32> to vector<16x32xf32>
    %52 = arith.addf %49, %51 : vector<16x32xf32>
    %53 = arith.truncf %52 : vector<16x32xf32> to vector<16x32xbf16>
    %c0_23 = arith.constant 0 : index
    %c0_24 = arith.constant 0 : index
    %54 = vector.load %arg8[%c0_23, %c0_24] : memref<16x32xbf16, #tpu.memory_space<vmem>>, vector<16x32xbf16>
    tpu.vector_store %arg8[%c0_23, %c0_24], %53 {strides = array<i32>} : memref<16x32xbf16, #tpu.memory_space<vmem>>, vector<16x32xbf16>,
    return
  }
  func.func @transform_0(%arg0: i32) -> (i32, i32) {
    %c0_i32 = arith.constant 0 : i32
    %c0_i32_0 = arith.constant 0 : i32
    return %arg0, %c0_i32 : i32, i32
  }
  func.func @transform_1(%arg0: i32) -> (i32, i32) {
    %c0_i32 = arith.constant 0 : i32
    %c0_i32_0 = arith.constant 0 : i32
    %c0_i32_1 = arith.constant 0 : i32
    return %c0_i32, %c0_i32_0 : i32, i32
  }
  func.func @transform_2(%arg0: i32) -> (i32, i32) {
    %c0_i32 = arith.constant 0 : i32
    %c0_i32_0 = arith.constant 0 : i32
    %c0_i32_1 = arith.constant 0 : i32
    return %c0_i32, %c0_i32_0 : i32, i32
  }
  func.func @transform_3(%arg0: i32) -> (i32, i32) {
    %c0_i32 = arith.constant 0 : i32
    %c0_i32_0 = arith.constant 0 : i32
    %c0_i32_1 = arith.constant 0 : i32
    return %c0_i32, %c0_i32_0 : i32, i32
  }
  func.func @transform_4(%arg0: i32) -> (i32, i32) {
    %c0_i32 = arith.constant 0 : i32
    %c0_i32_0 = arith.constant 0 : i32
    %c0_i32_1 = arith.constant 0 : i32
    return %c0_i32, %c0_i32_0 : i32, i32
  }
  func.func @transform_5(%arg0: i32) -> (i32, i32) {
    %c0_i32 = arith.constant 0 : i32
    %c0_i32_0 = arith.constant 0 : i32
    %c0_i32_1 = arith.constant 0 : i32
    return %c0_i32, %c0_i32_0 : i32, i32
  }
  func.func @transform_6(%arg0: i32) -> (i32, i32) {
    %c0_i32 = arith.constant 0 : i32
    %c0_i32_0 = arith.constant 0 : i32
    %c0_i32_1 = arith.constant 0 : i32
    return %c0_i32, %c0_i32_0 : i32, i32
  }
  func.func @transform_7(%arg0: i32) -> (i32, i32) {
    %c0_i32 = arith.constant 0 : i32
    %c0_i32_0 = arith.constant 0 : i32
    return %arg0, %c0_i32 : i32, i32
  }
}

module attributes {stable_mosaic.version = 11 : i64} {
  func.func @_linear_kernel(%arg0: i32, %arg1: memref<2x32xbf16, #tpu.memory_space<vmem>>, %arg2: memref<32x32xbf16, #tpu.memory_space<vmem>>, %arg3: memref<1x32xf32, #tpu.memory_space<vmem>>, %arg4: memref<2x32xbf16, #tpu.memory_space<vmem>>) attributes {dimension_semantics = [#tpu.dimension_semantics<parallel>], iteration_bounds = array<i64: 1>, scalar_prefetch = 0 : i64, scratch_operands = 0 : i64, tpu.core_type = #tpu.core_type<tc>, window_params = [{transform_indices = @transform_0, window_bounds = array<i64: 2, 32>}, {pipeline_mode = #tpu.pipeline_mode<synchronous>, transform_indices = @transform_1, window_bounds = array<i64: 32, 32>}, {pipeline_mode = #tpu.pipeline_mode<synchronous>, transform_indices = @transform_2, window_bounds = array<i64: 1, 32>}, {transform_indices = @transform_3, window_bounds = array<i64: 2, 32>}]} {
    %c0 = arith.constant 0 : index
    %c0_0 = arith.constant 0 : index
    %0 = vector.load %arg1[%c0, %c0_0] : memref<2x32xbf16, #tpu.memory_space<vmem>>, vector<2x32xbf16>
    %c0_1 = arith.constant 0 : index
    %c0_2 = arith.constant 0 : index
    %1 = vector.load %arg2[%c0_1, %c0_2] : memref<32x32xbf16, #tpu.memory_space<vmem>>, vector<32x32xbf16>
    %cst = arith.constant dense<0.000000e+00> : vector<2x32xf32>
    %2 = tpu.matmul %0, %1, %cst {dimension_numbers = #tpu.dot_dimension_numbers<[1], [0], [0], [1], [0, 0, 1, 1], [], []>} : vector<2x32xbf16>, vector<32x32xbf16>, vector<2x32xf32> -> vector<2x32xf32>
    %c0_3 = arith.constant 0 : index
    %c0_4 = arith.constant 0 : index
    %3 = vector.load %arg3[%c0_3, %c0_4] : memref<1x32xf32, #tpu.memory_space<vmem>>, vector<1x32xf32>
    %4 = vector.broadcast %3 : vector<1x32xf32> to vector<2x32xf32>
    %5 = arith.addf %2, %4 : vector<2x32xf32>
    %6 = math.tanh %5 : vector<2x32xf32>
    %7 = arith.truncf %6 : vector<2x32xf32> to vector<2x32xbf16>
    %c0_5 = arith.constant 0 : index
    %c0_6 = arith.constant 0 : index
    %8 = vector.load %arg4[%c0_5, %c0_6] : memref<2x32xbf16, #tpu.memory_space<vmem>>, vector<2x32xbf16>
    tpu.vector_store %arg4[%c0_5, %c0_6], %7 {strides = array<i32>} : memref<2x32xbf16, #tpu.memory_space<vmem>>, vector<2x32xbf16>,
    return
  }
  func.func @transform_0(%arg0: i32) -> (i32, i32) {
    %c0_i32 = arith.constant 0 : i32
    %c0_i32_0 = arith.constant 0 : i32
    return %arg0, %c0_i32 : i32, i32
  }
  func.func @transform_1(%arg0: i32) -> (i32, i32) {
    %c0_i32 = arith.constant 0 : i32
    %c0_i32_0 = arith.constant 0 : i32
    %c0_i32_1 = arith.constant 0 : i32
    return %c0_i32, %c0_i32_0 : i32, i32
  }
  func.func @transform_2(%arg0: i32) -> (i32, i32) {
    %c0_i32 = arith.constant 0 : i32
    %c0_i32_0 = arith.constant 0 : i32
    %c0_i32_1 = arith.constant 0 : i32
    return %c0_i32, %c0_i32_0 : i32, i32
  }
  func.func @transform_3(%arg0: i32) -> (i32, i32) {
    %c0_i32 = arith.constant 0 : i32
    %c0_i32_0 = arith.constant 0 : i32
    return %arg0, %c0_i32 : i32, i32
  }
}

module attributes {stable_mosaic.version = 11 : i64} {
  func.func @_head_kernel(%arg0: memref<2x32xbf16, #tpu.memory_space<vmem>>, %arg1: memref<2x8xf32, #tpu.memory_space<vmem>>, %arg2: memref<8x48xf32, #tpu.memory_space<vmem>>, %arg3: memref<1x48xf32, #tpu.memory_space<vmem>>, %arg4: memref<32x192xbf16, #tpu.memory_space<vmem>>, %arg5: memref<48x192xbf16, #tpu.memory_space<vmem>>, %arg6: memref<1x192xf32, #tpu.memory_space<vmem>>, %arg7: memref<192x128xbf16, #tpu.memory_space<vmem>>, %arg8: memref<1x128xf32, #tpu.memory_space<vmem>>, %arg9: memref<2x128xf32, #tpu.memory_space<vmem>>) attributes {dimension_semantics = [], scalar_prefetch = 0 : i64, scratch_operands = 0 : i64, tpu.core_type = #tpu.core_type<tc>} {
    %c0 = arith.constant 0 : index
    %c0_0 = arith.constant 0 : index
    %0 = vector.load %arg1[%c0, %c0_0] : memref<2x8xf32, #tpu.memory_space<vmem>>, vector<2x8xf32>
    %c0_1 = arith.constant 0 : index
    %c0_2 = arith.constant 0 : index
    %1 = vector.load %arg2[%c0_1, %c0_2] : memref<8x48xf32, #tpu.memory_space<vmem>>, vector<8x48xf32>
    %cst = arith.constant dense<0.000000e+00> : vector<2x48xf32>
    %2 = tpu.matmul %0, %1, %cst {dimension_numbers = #tpu.dot_dimension_numbers<[1], [0], [0], [1], [0, 0, 1, 1], [], []>} : vector<2x8xf32>, vector<8x48xf32>, vector<2x48xf32> -> vector<2x48xf32>
    %c0_3 = arith.constant 0 : index
    %c0_4 = arith.constant 0 : index
    %3 = vector.load %arg3[%c0_3, %c0_4] : memref<1x48xf32, #tpu.memory_space<vmem>>, vector<1x48xf32>
    %4 = vector.broadcast %3 : vector<1x48xf32> to vector<2x48xf32>
    %5 = arith.addf %2, %4 : vector<2x48xf32>
    %cst_5 = arith.constant 0.000000e+00 : f32
    %6 = vector.broadcast %cst_5 : f32 to vector<2x48xf32>
    %7 = arith.maximumf %5, %6 : vector<2x48xf32>
    %c0_6 = arith.constant 0 : index
    %c0_7 = arith.constant 0 : index
    %8 = vector.load %arg0[%c0_6, %c0_7] : memref<2x32xbf16, #tpu.memory_space<vmem>>, vector<2x32xbf16>
    %c0_8 = arith.constant 0 : index
    %c0_9 = arith.constant 0 : index
    %9 = vector.load %arg4[%c0_8, %c0_9] : memref<32x192xbf16, #tpu.memory_space<vmem>>, vector<32x192xbf16>
    %cst_10 = arith.constant dense<0.000000e+00> : vector<2x192xf32>
    %10 = tpu.matmul %8, %9, %cst_10 {dimension_numbers = #tpu.dot_dimension_numbers<[1], [0], [0], [1], [0, 0, 1, 1], [], []>} : vector<2x32xbf16>, vector<32x192xbf16>, vector<2x192xf32> -> vector<2x192xf32>
    %11 = arith.truncf %7 : vector<2x48xf32> to vector<2x48xbf16>
    %c0_11 = arith.constant 0 : index
    %c0_12 = arith.constant 0 : index
    %12 = vector.load %arg5[%c0_11, %c0_12] : memref<48x192xbf16, #tpu.memory_space<vmem>>, vector<48x192xbf16>
    %cst_13 = arith.constant dense<0.000000e+00> : vector<2x192xf32>
    %13 = tpu.matmul %11, %12, %cst_13 {dimension_numbers = #tpu.dot_dimension_numbers<[1], [0], [0], [1], [0, 0, 1, 1], [], []>} : vector<2x48xbf16>, vector<48x192xbf16>, vector<2x192xf32> -> vector<2x192xf32>
    %14 = arith.addf %10, %13 : vector<2x192xf32>
    %c0_14 = arith.constant 0 : index
    %c0_15 = arith.constant 0 : index
    %15 = vector.load %arg6[%c0_14, %c0_15] : memref<1x192xf32, #tpu.memory_space<vmem>>, vector<1x192xf32>
    %16 = vector.broadcast %15 : vector<1x192xf32> to vector<2x192xf32>
    %17 = arith.addf %14, %16 : vector<2x192xf32>
    %cst_16 = arith.constant 0.000000e+00 : f32
    %18 = vector.broadcast %cst_16 : f32 to vector<2x192xf32>
    %19 = arith.maximumf %17, %18 : vector<2x192xf32>
    %20 = arith.truncf %19 : vector<2x192xf32> to vector<2x192xbf16>
    %c0_17 = arith.constant 0 : index
    %c0_18 = arith.constant 0 : index
    %21 = vector.load %arg7[%c0_17, %c0_18] : memref<192x128xbf16, #tpu.memory_space<vmem>>, vector<192x128xbf16>
    %cst_19 = arith.constant dense<0.000000e+00> : vector<2x128xf32>
    %22 = tpu.matmul %20, %21, %cst_19 {dimension_numbers = #tpu.dot_dimension_numbers<[1], [0], [0], [1], [0, 0, 1, 1], [], []>} : vector<2x192xbf16>, vector<192x128xbf16>, vector<2x128xf32> -> vector<2x128xf32>
    %c0_20 = arith.constant 0 : index
    %c0_21 = arith.constant 0 : index
    %23 = vector.load %arg8[%c0_20, %c0_21] : memref<1x128xf32, #tpu.memory_space<vmem>>, vector<1x128xf32>
    %24 = vector.broadcast %23 : vector<1x128xf32> to vector<2x128xf32>
    %25 = arith.addf %22, %24 : vector<2x128xf32>
    %c0_22 = arith.constant 0 : index
    %c0_23 = arith.constant 0 : index
    %26 = vector.load %arg9[%c0_22, %c0_23] : memref<2x128xf32, #tpu.memory_space<vmem>>, vector<2x128xf32>
    tpu.vector_store %arg9[%c0_22, %c0_23], %25 {strides = array<i32>} : memref<2x128xf32, #tpu.memory_space<vmem>>, vector<2x128xf32>,
    return
  }
}

</mosaic_0001>

<bundles_post_ra>
// kernel: tpu_custom_call.1
= control target key start
LH: loop header
LB: loop body
LE: loop exit
PB: predicated region body
PF: predicated region fallthrough
CT: control target
= control target key end

     0   :  { %7 = vsyncpa [#allocation3], 0  ;;  %s690_s0 = inlined_call_operand.hbm [shape: f32[16,128], index: 0, kind: input, shape index: {}]   ;;  %s691_s1 = inlined_call_operand.hbm [shape: f32[8,128], index: 1, kind: input, shape index: {}]   ;;  %s692_s2 = inlined_call_operand.hbm [shape: f32[16,128], index: 2, kind: output, shape index: {}]  }
   0x1   :  { %9 = vsyncpa [#allocation3 + $0x1], 0 }
   0x2   :  { %10 = vsyncpa [#allocation6], 0 }
   0x3   :  { %11 = vsyncpa [#allocation4], 0 }
   0x4   :  { %13 = vsyncpa [#allocation4 + $0x1], 0  ;;  %s489_s9 = smov 0   ;;  %s491_s10 = smov 0  }
   0x5   :  { %s493_s11 = smov 0   ;;  %s495_s12 = smov 0  }
   0x6 LB: > { %s510_s13 = sadd.s32 4294967295, %s469_s12   ;;  %s270_s14 = sadd.s32 4294967294, %s469_s12   ;;  %s469_s12 = sphi %s495_s12, %s716_s12   ;;  %s465_s11 = sphi %s493_s11, %s715_s11   ;;  %s461_s10 = sphi %s491_s10, %s714_s10   ;;  %s457_s9 = sphi %s489_s9, %s713_s9  }
   0x7   : > { %p39_p0 = scmp.ne.s32.totalorder %s461_s10, %s457_s9  ;;  %p693_p1 = scmp.eq.s32.totalorder %s510_s13, 0 }
   0x8   : > { %p90_p3 = scmp.eq.s32.totalorder %s270_s14, 1  ;;  %p271_p5 = scmp.ge.s32.totalorder %s469_s12, 1 }
   0x9   : > { %p519_p4 = por %p693_p1, %p39_p0  ;;  %p97_p7 = scmp.lt.s32.totalorder %s469_s12, 3 }
   0xa   : > { %p524_p6 = por %p90_p3, %p39_p0  ;;  %s471_s18 = smov [#allocation5]  }
   0xb   : > { %s696_s15 = scalar_select %p519_p4, 1, 0 }
   0xc   : > { %s697_s16 = scalar_select %p524_p6, 1, 0 }
   0xd   : > { %p529_p8 = pnand %p271_p5, %p97_p7  ;;  %s110_s19 = sshll.u32 %s471_s18, 4  ;;  %s111_s19 = int_to_ptr.vmem [resolvable:$true] %s110_s19 }
   0xe   : > { %s537_s20 = sadd.s32 1, %s469_s12   ;;  %s26_s24 = sadd.s32 1, %s465_s11 }
   0xf   : > { %s698_s17 = scalar_select %p529_p8, 1, 0 }
  0x10   : > { %p292_p10 = pneg %p529_p8  ;;  %s23_s22 = ssub.s32 %s469_s12, %s537_s20 }
  0x11   : > { %p547_p12 = scmp.eq.s32.totalorder %s23_s22, 0  ;;  %s341_s27 = scalar_lea.hbm %s691_s1, 128 }
  0x12   : > { %p541_p11 = pnand %p292_p10, %p693_p1  ;;  %p342_p0 = scmp.ne.s32.totalorder %s691_s1, %s341_s27 }
  0x13   : > { %s700_s23 = scalar_select %p547_p12, 1, 0 }
  0x14   : > { %p343_p3 = pneg %p541_p11  ;;  %p348_p10 = scmp.lt.u32.totalorder %s341_s27, %s691_s1 }
  0x16   : > { %p344_p5 = pnand %p343_p3, %p342_p0 }
  0x18   : > { %p345_p7 = pneg %p344_p5 }
  0x1a   : > { %p350_p9 = pnand %p348_p10, %p345_p7 }
  0x1c   : > { %353 = shalt.err (!%p350_p9)
}
  0x1d   : > { %s354_s4 = scalar_lea.vmem %s111_s19, 128  ;;  %p362_p6 = scmp.lt.s32.totalorder %s111_s19, %s111_s19 }
  0x1e   : > { %p355_p1 = scmp.ne.s32.totalorder %s111_s19, %s354_s4  ;;  %p363_p4 = scmp.lt.s32.totalorder %s354_s4, %s354_s4 }
  0x20   : > { %p357_p2 = pnand %p355_p1, %p343_p3  ;;  %p364_p8 = por %p363_p4, %p362_p6 }
  0x22   : > { %p358_p13 = pneg %p357_p2 }
  0x24   : > { %p365_p12 = pnand %p364_p8, %p358_p13 }
  0x26   : > { %368 = shalt.err (!%p365_p12)
}
  0x27   : > { %295 = dma.hbm_to_vmem [thread:$0]  (!%p541_p11), %s691_s1, 128, %s111_s19, [#allocation6]  }
  0x28   : > { %p701_p1 = scmp.ne.s32.totalorder %s700_s23, 0  ;;  %p34_p2 = scmp.eq.s32.totalorder %s469_s12, 0 }
  0x29   : > { %p702_p4 = scmp.ne.s32.totalorder %s465_s11, %s461_s10  ;;  %p703_p6 = scmp.eq.s32.totalorder %s510_s13, 1 }
  0x2a   : > { %s573_s7 = scalar_select %p701_p1, %s465_s11, %s26_s24  }
  0x2b   : > { %p581_p8 = por %p703_p6, %p702_p4  ;;  %p305_p9 = scmp.lt.s32.totalorder %s469_s12, 2 }
  0x2c   : > { %s121_s14 = sand.u32 1, %s465_s11   ;;  %p705_p12 = pmov %p702_p4 }
  0x2d   : > { %s274_s18 = sshll.u32 %s121_s14, 3  ;;  %s275_s21 = sshll.u32 %s469_s12, 7 }
  0x2e   : > { %p35_p13 = por %p34_p2, %p705_p12  ;;  %s594_s19 = scalar_lea.hbm %s690_s0, %s275_s21 }
  0x2f   : > { %s125_s23 = scalar_lea.vmem [#allocation2], %s274_s18  ;;  %s122_s27 = scalar_lea.sflag [#allocation3], %s121_s14 }
  0x30   : > { %s132_s24 = sshll.u32 %s125_s23, 4  ;;  %p596_p11 = pnand %p305_p9, %p35_p13  ;;  %s600_s24 = int_to_ptr.vmem [resolvable:$true] %s132_s24 }
  0x31   : > { %s369_s28 = scalar_lea.hbm %s594_s19, 128  ;;  %s374_s3 = scalar_lea.hbm %s690_s0, 256 }
  0x32   : > { %p370_p0 = scmp.ne.s32.totalorder %s594_s19, %s369_s28  ;;  %p371_p3 = pneg %p596_p11 }
  0x33   : > { %p375_p10 = scmp.lt.u32.totalorder %s594_s19, %s690_s0  ;;  %p376_p1 = scmp.lt.u32.totalorder %s374_s3, %s369_s28 }
  0x34   : > { %p372_p5 = pnand %p371_p3, %p370_p0  ;;  %p378_p4 = scmp.lt.u32.totalorder %s369_s28, %s594_s19 }
  0x35   : > { %p377_p2 = por %p376_p1, %p375_p10 }
  0x36   : > { %p373_p7 = pneg %p372_p5 }
  0x37   : > { %p379_p6 = por %p378_p4, %p377_p2 }
  0x39   : > { %p380_p9 = pnand %p379_p6, %p373_p7 }
  0x3b   : > { %383 = shalt.err (!%p380_p9)
}
  0x3c   : > { %s384_s6 = scalar_lea.vmem %s600_s24, 128  ;;  %s472_s14 = smov [#allocation2]  }
  0x3d   : > { %p385_p12 = scmp.ne.s32.totalorder %s600_s24, %s384_s6  ;;  %s389_s18 = sshll.u32 %s472_s14, 4  ;;  %s390_s18 = int_to_ptr.vmem [resolvable:$false] %s389_s18 }
  0x3e   : > { %s391_s21 = scalar_lea.vmem %s390_s18, 256  ;;  %p392_p5 = scmp.lt.s32.totalorder %s600_s24, %s390_s18 }
  0x3f   : > { %p387_p13 = pnand %p385_p12, %p371_p3  ;;  %p393_p10 = scmp.lt.s32.totalorder %s391_s21, %s384_s6 }
  0x41   : > { %p388_p0 = pneg %p387_p13  ;;  %p394_p1 = por %p393_p10, %p392_p5 }
  0x43   : > { %p395_p2 = pnand %p394_p1, %p388_p0 }
  0x45   : > { %398 = shalt.err (!%p395_p2)
}
  0x46   : > { %299 = dma.hbm_to_vmem [thread:$0]  (!%p596_p11), %s594_s19, 128, %s600_s24, %s122_s27  }
  0x47   : > { %p707_p7 = scmp.ne.s32.totalorder %s698_s17, 0 }
  0x48   : > { %s630_s22 = sand.u32 (!%p707_p7), 1, %s461_s10   ;;  %p708_p3 = scmp.ne.s32.totalorder (!%p707_p7), %s696_s15, 0 }
  0x49   : > { %141 = sbr.rel (%p707_p7) target bundleno = 109 (0x6d), region = 28  ;;  %s277_s25 = sshll.u32 (!%p707_p7), %s630_s22, 3 }
  0x4a   : > { %s144_s23 = scalar_lea.sflag (!%p707_p7), [#allocation3], %s630_s22  ;;  %s147_s28 = scalar_lea.vmem (!%p707_p7), [#allocation2], %s277_s25 }
  0x50   : > { %444 = dma.done.wait (%p708_p3), %s144_s23, 128  }
  0x51   : > { %446 = vsyncadd (%p708_p3), %s144_s23, 4294967168  ;;  %p709_p4 = scmp.eq.s32.totalorder %s510_s13, 0 }
  0x53   : > { %448 = dma.done.wait (%p709_p4), [#allocation6], 128   ;;  %p710_p11 = pmov %p709_p4 }
  0x54   : > { %s171_s17 = scalar_lea.vmem [#allocation7], %s277_s25  ;;  %s281_s24 = sshll.u32 %s510_s13, 7  ;;  %v172_v0 = vld [vmem:[%s147_s28] sm:$0xff]  ;;  %v173_v1 = vld [vmem:[#allocation5] sm:$0xff] }
  0x55   : > { %450 = vsyncadd (%p710_p11), [#allocation6], 4294967168  ;;  %s190_s19 = sshll.u32 %s171_s17, 4  ;;  %v174_v2 = vadd.f32 %v173_v1, %v172_v0  ;;  %s648_s27 = scalar_lea.hbm %s692_s2, %s281_s24  ;;  %s643_s19 = int_to_ptr.vmem [resolvable:$true] %s190_s19 }
  0x56   : > { %s177_s29 = scalar_lea.sflag [#allocation4], %s630_s22  ;;  %s399_s30 = scalar_lea.vmem %s643_s19, 128 }
  0x57   : > { %175 = vst [vmem:[%s171_s17] sm:$0xff] %v174_v2  ;;  %p400_p6 = scmp.ne.s32.totalorder %s643_s19, %s399_s30  ;;  %s473_s13 = smov [#allocation7]  }
  0x58   : > { %s403_s3 = sshll.u32 %s473_s13, 4  ;;  %s404_s3 = int_to_ptr.vmem [resolvable:$false] %s403_s3 }
  0x59   : > { %p401_p9 = pnand %p400_p6, %p581_p8  ;;  %s405_s4 = scalar_lea.vmem %s404_s3, 256 }
  0x5a   : > { %p406_p13 = scmp.lt.s32.totalorder %s643_s19, %s404_s3  ;;  %p407_p0 = scmp.lt.s32.totalorder %s405_s4, %s399_s30 }
  0x5b   : > { %p402_p12 = pneg %p401_p9 }
  0x5c   : > { %p408_p5 = por %p407_p0, %p406_p13 }
  0x5e   : > { %p409_p10 = pnand %p408_p5, %p402_p12 }
  0x60   : > { %412 = shalt.err (!%p409_p10)
}
  0x61   : > { %s413_s5 = scalar_lea.hbm %s648_s27, 128  ;;  %s417_s18 = scalar_lea.hbm %s692_s2, 256 }
  0x62   : > { %p414_p1 = scmp.ne.s32.totalorder %s648_s27, %s413_s5  ;;  %p418_p3 = scmp.lt.u32.totalorder %s648_s27, %s692_s2 }
  0x63   : > { %p419_p4 = scmp.lt.u32.totalorder %s417_s18, %s413_s5  ;;  %p421_p6 = scmp.lt.u32.totalorder %s413_s5, %s648_s27 }
  0x64   : > { %p415_p2 = pnand %p414_p1, %p581_p8 }
  0x65   : > { %p420_p11 = por %p419_p4, %p418_p3 }
  0x66   : > { %p416_p7 = pneg %p415_p2 }
  0x67   : > { %p422_p9 = por %p421_p6, %p420_p11 }
  0x69   : > { %p423_p12 = pnand %p422_p9, %p416_p7 }
  0x6b   : > { %426 = shalt.err (!%p423_p12)
}
  0x6c   : > { %290 = dma.vmem_to_hbm [thread:$0]  (%p581_p8), %s643_s19, 128, %s648_s27, %s177_s29  }
  0x6d PF: > { %s202_s25 = sand.u32 1, %s457_s9   ;;  %p711_p13 = scmp.ne.s32.totalorder %s697_s16, 0 }
  0x6e   : > { %p712_p0 = scmp.ge.s32.totalorder %s469_s12, 2  ;;  %s203_s23 = scalar_lea.sflag [#allocation4], %s202_s25 }
  0x70   : > { %p301_p5 = pnand %p712_p0, %p711_p13 }
  0x72   : > { %452 = dma.done.wait (!%p301_p5), %s203_s23, 128  }
  0x73   : > { %454 = vsyncadd (!%p301_p5), %s203_s23, 4294967168  ;;  %p16_p10 = scmp.ge.s32.totalorder %s537_s20, 4   ;;  %s713_s9 = smov %s461_s10 }
  0x74   : > { %s714_s10 = smov %s465_s11  ;;  %s715_s11 = smov %s573_s7 }
  0x75   : > { %s716_s12 = smov %s537_s20  ;;  %18 = sbr.rel (!%p16_p10) target bundleno = 6 (0x6), region = 77 }
  0x7c   :  { %208 = vsyncpa [#allocation3], 1 }
  0x7d   :  { %210 = vsyncpa [#allocation3 + $0x1], 1 }
  0x7e   :  { %211 = vsyncpa [#allocation6], 1 }
  0x7f   :  { %212 = vsyncpa [#allocation4], 1 }
  0x80   :  { %214 = vsyncpa [#allocation4 + $0x1], 1 }

// kernel: _lambda_.9
= control target key start
LH: loop header
LB: loop body
LE: loop exit
PB: predicated region body
PF: predicated region fallthrough
CT: control target
= control target key end

     0   :  { %vm18_vm0 = vcmask 261120   ;;  %vm72_vm1 = vcmask 257024   ;;  %s132_s0 = inlined_call_operand.vmem [shape: bf16[16,32], index: 0, kind: input, shape index: {}]   ;;  %s133_s1 = inlined_call_operand.vmem [shape: f32[1,32], index: 1, kind: input, shape index: {}]   ;;  %s134_s2 = inlined_call_operand.vmem [shape: f32[1,32], index: 2, kind: input, shape index: {}]   ;;  %s135_s3 = inlined_call_operand.vmem [shape: bf16[16,32], index: 3, kind: output, shape index: {}]  }
   0x1   :  { %v86_v0 = vld [vmem:[%s132_s0] sm:$0xff]  }
   0x2   :  { %v87_v1 = vunpack.c.l.bf16 %v86_v0  ;;  %v88_v2 = vunpack.c.h.bf16 %v86_v0  ;;  %v79_v22 = vld [vmem:[%s133_s1] ss:$0 sm:$0xff] }
   0x3   :  { %v80_v24 = vld [vmem:[%s134_s2] ss:$0 sm:$0xff] }
   0x4   :  { %v19_v3 = vsel %vm18_vm0, %v87_v1, 0.0  ;;  %v22_v4 = vsel %vm18_vm0, %v88_v2, 0.0 }
   0x5   :  { %20 = vadd.xlane.f32.xlu0 %v19_v3 }
   0x9   :  { %23 = vadd.xlane.f32.xlu0 %v22_v4 }
  0x92   :  { %v21_v5 = vpop.xlane.xlu0 %20 }
  0x93   :  { %v26_v6 = vmul.f32 0.03125, %v21_v5 }
  0x95   :  { %v28_v7 = vsub.f32 %v87_v1, %v26_v6 }
  0x96   :  { %v24_v8 = vpop.xlane.xlu0 %23 }
  0x97   :  { %v27_v9 = vmul.f32 0.03125, %v24_v8  ;;  %v30_v10 = vmul.f32 %v28_v7, %v28_v7 }
  0x99   :  { %v29_v11 = vsub.f32 %v88_v2, %v27_v9  ;;  %v32_v12 = vsel %vm18_vm0, %v30_v10, 0.0 }
  0x9a   :  { %33 = vadd.xlane.f32.xlu1 %v32_v12 }
  0x9b   :  { %v31_v13 = vmul.f32 %v29_v11, %v29_v11 }
  0x9d   :  { %v35_v14 = vsel %vm18_vm0, %v31_v13, 0.0 }
  0x9e   :  { %36 = vadd.xlane.f32.xlu1 %v35_v14 }
 0x127   :  { %v34_v15 = vpop.xlane.xlu1 %33 }
 0x128   :  { %v38_v16 = vmul.f32 0.03125, %v34_v15 }
 0x12a   :  { %v40_v17 = vadd.f32 1e-12, %v38_v16 }
 0x12b   :  { %v37_v18 = vpop.xlane.xlu1 %36 }
 0x12c   :  { %89 = vrsqrt.f32 %v40_v17  ;;  %v39_v19 = vmul.f32 0.03125, %v37_v18 }
 0x12e   :  { %v41_v20 = vadd.f32 1e-12, %v39_v19 }
 0x130   :  { %91 = vrsqrt.f32 %v41_v20 }
 0x136   :  { %v90_v21 = vpop.eup %89 }
 0x137   :  { %v44_v23 = vmul.f32 %v90_v21, %v28_v7 }
 0x139   :  { %v53_v25 = vmul.f32 %v79_v22, %v44_v23 }
 0x13a   :  { %v92_v26 = vpop.eup %91 }
 0x13b   :  { %v62_v27 = vadd.f32 %v80_v24, %v53_v25  ;;  %v45_v28 = vmul.f32 %v92_v26, %v29_v11 }
 0x13d   :  { %v83_v29 = vpack.c.bf16 %v62_v27, %v62_v27  ;;  %v54_v30 = vmul.f32 %v79_v22, %v45_v28 }
 0x13f   :  { %73 = vst.msk [vmem:[%s135_s3] sm:$0xf] %vm72_vm1, %v83_v29  ;;  %v63_v31 = vadd.f32 %v80_v24, %v54_v30 }
 0x141   :  { %v84_v32 = vpack.c.bf16 %v63_v31, %v63_v31 }
 0x143   :  { %74 = vst.msk [vmem:[%s135_s3 + $0x4] sm:$0xf] %vm72_vm1, %v84_v32 }

// kernel: _lambda_.10
= control target key start
LH: loop header
LB: loop body
LE: loop exit
PB: predicated region body
PF: predicated region fallthrough
CT: control target
= control target key end

     0   :  { %v159_v0 = vmov 0.0   ;;  %vm160_vm0 = vmmov 0   ;;  %vm48_vm1 = vcmask 261120   ;;  %vm101_vm2 = vcmask 257024   ;;  %s162_s27 = smov 96   ;;  %s229_s1 = inlined_call_operand.vmem [shape: bf16[32,96], index: 1, kind: input, shape index: {}]   ;;  %s230_s0 = inlined_call_operand.vmem [shape: bf16[16,32], index: 0, kind: input, shape index: {}]   ;;  %s231_s2 = inlined_call_operand.vmem [shape: f32[1,96], index: 2, kind: input, shape index: {}]   ;;  %s232_s3 = inlined_call_operand.vmem [shape: bf16[16,32], index: 3, kind: output, shape index: {0}]   ;;  %s233_s5 = inlined_call_operand.vmem [shape: bf16[16,32], index: 5, kind: output, shape index: {2}]   ;;  %s234_s4 = inlined_call_operand.vmem [shape: bf16[16,32], index: 4, kind: output, shape index: {1}]  }
   0x1   :  { %144 = vmatprep.subr.bf16.mxu0 %v159_v0  ;;  %v156_v1 = vld [vmem:[%s229_s1] sm:$0xff]   ;;  %148 = vmatprep.mubr.msk.bf16.mxu0 %vm160_vm0, %v159_v0  ;;  %v157_v2 = vld [vmem:[%s229_s1 + $0x8] sm:$0xff]  }
   0x2   :  { %145 = vmatpush3.bf16.msra.mxu0 %v156_v1  ;;  %v158_v3 = vld [vmem:[%s230_s0] sm:$0xff]   ;;  %s161_s0 = smov 64  }
   0x3   :  { %146 = vmatprep.subr.bf16.mxu0 %v159_v0  ;;  %v132_v4 = vld [vmem:[%s231_s2] ss:$0 sm:$0xff] }
   0x6   :  { %147 = vmatpush3.bf16.msra.mxu0 %v157_v2 }
   0x9   :  { %149 = vmatmul.mubr.msk.bf16.vlgmr.msra.gmra.mrb[0].mxu0 %vm48_vm1, %v158_v3 }
  0xdc   :  { %v86_v5 = vpop.f32.mrb[0].mxu0 }
  0xdd   :  { %v87_v6 = vadd.f32 %v132_v4, %v86_v5  ;;  %v150_v7 = vpop.f32.mrb[1].mxu0 }
  0xde   :  { %v89_v8 = vpop.f32.mrb[2].mxu0 }
  0xdf   :  { %v139_v9 = vpack.c.bf16 %v87_v6, %v87_v6  ;;  %v90_v10 = vadd.f32 %v132_v4, %v89_v8  ;;  %v151_v11 = vpop.f32.mrb[3].mxu0 }
  0xe1   :  { %102 = vst.msk [vmem:[%s232_s3] sm:$0xf] %vm101_vm2, %v139_v9  ;;  %v140_v12 = vpack.c.bf16 %v90_v10, %v90_v10  ;;  %112 = vrot.lane.b32.xlu1 %v139_v9, %s161_s0  ;;  %104 = vrot.lane.b32.xlu0 %v139_v9, %s162_s27 }
  0xe3   :  { %103 = vst.msk [vmem:[%s232_s3 + $0x4] sm:$0xf] %vm101_vm2, %v140_v12 }
  0xe5   :  { %114 = vrot.lane.b32.xlu1 %v140_v12, %s161_s0  ;;  %106 = vrot.lane.b32.xlu0 %v140_v12, %s162_s27 }
 0x153   :  { %v113_v13 = vpop.permute.xlu1 %112  ;;  %v105_v14 = vpop.permute.xlu0 %104 }
 0x154   :  { %118 = vst.msk [vmem:[%s233_s5] sm:$0xf] %vm101_vm2, %v113_v13  ;;  %110 = vst.msk [vmem:[%s234_s4] sm:$0xf] %vm101_vm2, %v105_v14 }
 0x157   :  { %v115_v15 = vpop.permute.xlu1 %114  ;;  %v107_v16 = vpop.permute.xlu0 %106 }
 0x158   :  { %119 = vst.msk [vmem:[%s233_s5 + $0x4] sm:$0xf] %vm101_vm2, %v115_v15  ;;  %111 = vst.msk [vmem:[%s234_s4 + $0x4] sm:$0xf] %vm101_vm2, %v107_v16 }

// kernel: _lambda_.12
= control target key start
LH: loop header
LB: loop body
LE: loop exit
PB: predicated region body
PF: predicated region fallthrough
CT: control target
= control target key end

     0   :  { %v332_v0 = vmov 0.0   ;;  %vm333_vm0 = vmmov 0   ;;  %vm57_vm1 = vcmask 261120   ;;  %vm160_vm2 = vcmask 523264   ;;  %s418_s1 = inlined_call_operand.vmem [shape: bf16[32,64], index: 1, kind: input, shape index: {}]   ;;  %s419_s0 = inlined_call_operand.vmem [shape: bf16[16,32], index: 0, kind: input, shape index: {}]   ;;  %s420_s3 = inlined_call_operand.vmem [shape: bf16[64,32], index: 3, kind: input, shape index: {}]   ;;  %s421_s2 = inlined_call_operand.vmem [shape: f32[1,64], index: 2, kind: input, shape index: {}]   ;;  %s422_s4 = inlined_call_operand.vmem [shape: f32[1,32], index: 4, kind: input, shape index: {}]   ;;  %s423_s5 = inlined_call_operand.vmem [shape: f32[1,32], index: 5, kind: input, shape index: {}]   ;;  %s424_s6 = inlined_call_operand.vmem [shape: f32[1,32], index: 6, kind: input, shape index: {}]   ;;  %s425_s7 = inlined_call_operand.vmem [shape: bf16[16,32], index: 7, kind: output, shape index: {}]  }
   0x1   :  { %294 = vmatprep.subr.bf16.mxu0 %v332_v0  ;;  %v316_v1 = vld [vmem:[%s418_s1] sm:$0xff]   ;;  %298 = vmatprep.mubr.msk.bf16.mxu0 %vm333_vm0, %v332_v0  ;;  %v317_v2 = vld [vmem:[%s418_s1 + $0x8] sm:$0xff]   ;;  %v321_v6 = vld [vmem:[%s420_s3 + $0x10] sm:$0xff]   ;;  %vm262_vm3 = vcmask 257024  }
   0x2   :  { %302 = vmatprep.subr.bf16.mxu1 %v332_v0  ;;  %310 = vmatprep.mubr.msk.bf16.mxu1 %vm333_vm0, %v332_v0  ;;  %v27_v3 = vld [vmem:[%s419_s0] sm:$0xff]   ;;  %v320_v5 = vld [vmem:[%s420_s3 + $0x8] sm:$0xff]   ;;  %v322_v7 = vld [vmem:[%s420_s3 + $0x18] sm:$0xff]  }
   0x3   :  { %295 = vmatpush3.bf16.msra.mxu0 %v316_v1  ;;  %v319_v4 = vld [vmem:[%s420_s3] sm:$0xff]   ;;  %v205_v35 = vunpack.c.l.bf16 %v27_v3  ;;  %v206_v39 = vunpack.c.h.bf16 %v27_v3 }
   0x4   :  { %296 = vmatprep.subr.bf16.mxu0 %v332_v0  ;;  %303 = vmatpush3.bf16.msra.mxu1 %v319_v4  ;;  %v269_v8 = vld [vmem:[%s421_s2] ss:$0 sm:$0xff] }
   0x5   :  { %304 = vmatprep.subr.bf16.mxu1 %v332_v0  ;;  %v274_v34 = vld [vmem:[%s422_s4] ss:$0 sm:$0xff] }
   0x7   :  { %297 = vmatpush3.bf16.msra.mxu0 %v317_v2  ;;  %v281_v2 = vld [vmem:[%s424_s6] ss:$0 sm:$0xff] }
   0x8   :  { %305 = vmatpush3.bf16.msra.mxu1 %v320_v5 }
   0x9   :  { %306 = vmatprep.subr.bf16.mxu1 %v332_v0 }
   0xa   :  { %299 = vmatmul.mubr.msk.bf16.vlgmr.msra.gmra.mrb[0].mxu0 %vm57_vm1, %v27_v3 }
   0xc   :  { %307 = vmatpush3.bf16.msra.mxu1 %v321_v6 }
   0xd   :  { %308 = vmatprep.subr.bf16.mxu1 %v332_v0  ;;  %v280_v0 = vld [vmem:[%s423_s5] ss:$0 sm:$0xff] }
  0x10   :  { %309 = vmatpush3.bf16.msra.mxu1 %v322_v7 }
  0xdd   :  { %v95_v9 = vpop.f32.mrb[0].mxu0 }
  0xde   :  { %v96_v10 = vadd.f32 %v269_v8, %v95_v9  ;;  %v300_v11 = vpop.f32.mrb[1].mxu0 }
  0xdf   :  { %v98_v12 = vpop.f32.mrb[2].mxu0 }
  0xe0   :  { %v102_v13 = vmul.f32 %v96_v10, %v96_v10  ;;  %v99_v14 = vadd.f32 %v269_v8, %v98_v12  ;;  %v301_v15 = vpop.f32.mrb[3].mxu0 }
  0xe2   :  { %v104_v16 = vmul.f32 %v102_v13, %v96_v10  ;;  %v103_v17 = vmul.f32 %v99_v14, %v99_v14 }
  0xe4   :  { %v106_v18 = vmul.f32 0.044715, %v104_v16  ;;  %v105_v19 = vmul.f32 %v103_v17, %v99_v14 }
  0xe6   :  { %v108_v20 = vadd.f32 %v106_v18, %v96_v10  ;;  %v107_v21 = vmul.f32 0.044715, %v105_v19 }
  0xe8   :  { %v110_v22 = vmul.f32 0.7978846, %v108_v20  ;;  %v109_v23 = vadd.f32 %v107_v21, %v99_v14 }
  0xea   :  { %324 = vtanh.f32 %v110_v22  ;;  %v111_v24 = vmul.f32 0.7978846, %v109_v23 }
  0xec   :  { %326 = vtanh.f32 %v111_v24 }
  0xf4   :  { %v325_v25 = vpop.eup %324 }
  0xf5   :  { %v114_v26 = vadd.f32 1.0, %v325_v25 }
  0xf6   :  { %v327_v27 = vpop.eup %326 }
  0xf7   :  { %v116_v28 = vmul.f32 0.5, %v114_v26  ;;  %v115_v29 = vadd.f32 1.0, %v327_v27 }
  0xf9   :  { %v117_v30 = vmul.f32 0.5, %v115_v29  ;;  %v118_v31 = vmul.f32 %v116_v28, %v96_v10 }
  0xfb   :  { %v119_v32 = vmul.f32 %v117_v30, %v99_v14 }
  0xfd   :  { %v120_v33 = vpack.c.bf16 %v119_v32, %v118_v31 }
  0xff   :  { %311 = vmatmul.mubr.msk.bf16.vlgmr.msra.gmra.mrb[0].mxu1 %vm160_vm2, %v120_v33 }
 0x1d2   :  { %v198_v36 = vpop.f32.mrb[0].mxu1 }
 0x1d3   :  { %v199_v37 = vadd.f32 %v274_v34, %v198_v36  ;;  %v312_v38 = vpop.f32.mrb[1].mxu1 }
 0x1d4   :  { %v201_v40 = vpop.f32.mrb[2].mxu1 }
 0x1d5   :  { %v202_v41 = vadd.f32 %v274_v34, %v201_v40  ;;  %v313_v42 = vpop.f32.mrb[3].mxu1  ;;  %v207_v43 = vadd.f32 %v205_v35, %v199_v37 }
 0x1d7   :  { %v209_v44 = vsel %vm57_vm1, %v207_v43, 0.0  ;;  %v208_v45 = vadd.f32 %v206_v39, %v202_v41 }
 0x1d8   :  { %210 = vadd.xlane.f32.xlu0 %v209_v44 }
 0x1d9   :  { %v212_v46 = vsel %vm57_vm1, %v208_v45, 0.0 }
 0x1dc   :  { %213 = vadd.xlane.f32.xlu0 %v212_v46 }
 0x265   :  { %v211_v47 = vpop.xlane.xlu0 %210 }
 0x266   :  { %v216_v48 = vmul.f32 0.03125, %v211_v47 }
 0x268   :  { %v218_v49 = vsub.f32 %v207_v43, %v216_v48 }
 0x269   :  { %v214_v50 = vpop.xlane.xlu0 %213 }
 0x26a   :  { %v217_v51 = vmul.f32 0.03125, %v214_v50  ;;  %v220_v52 = vmul.f32 %v218_v49, %v218_v49 }
 0x26c   :  { %v219_v53 = vsub.f32 %v208_v45, %v217_v51  ;;  %v222_v54 = vsel %vm57_vm1, %v220_v52, 0.0 }
 0x26d   :  { %223 = vadd.xlane.f32.xlu1 %v222_v54 }
 0x26e   :  { %v221_v55 = vmul.f32 %v219_v53, %v219_v53 }
 0x270   :  { %v225_v56 = vsel %vm57_vm1, %v221_v55, 0.0 }
 0x271   :  { %226 = vadd.xlane.f32.xlu1 %v225_v56 }
 0x2fa   :  { %v224_v57 = vpop.xlane.xlu1 %223 }
 0x2fb   :  { %v228_v58 = vmul.f32 0.03125, %v224_v57 }
 0x2fd   :  { %v230_v59 = vadd.f32 1e-12, %v228_v58 }
 0x2fe   :  { %v227_v60 = vpop.xlane.xlu1 %226 }
 0x2ff   :  { %328 = vrsqrt.f32 %v230_v59  ;;  %v229_v61 = vmul.f32 0.03125, %v227_v60 }
 0x301   :  { %v231_v62 = vadd.f32 1e-12, %v229_v61 }
 0x303   :  { %330 = vrsqrt.f32 %v231_v62 }
 0x309   :  { %v329_v63 = vpop.eup %328 }
 0x30a   :  { %v234_v1 = vmul.f32 %v329_v63, %v218_v49 }
 0x30c   :  { %v243_v3 = vmul.f32 %v280_v0, %v234_v1 }
 0x30d   :  { %v331_v4 = vpop.eup %330 }
 0x30e   :  { %v252_v5 = vadd.f32 %v281_v2, %v243_v3  ;;  %v235_v6 = vmul.f32 %v331_v4, %v219_v53 }
 0x310   :  { %v284_v7 = vpack.c.bf16 %v252_v5, %v252_v5  ;;  %v244_v8 = vmul.f32 %v280_v0, %v235_v6 }
 0x312   :  { %263 = vst.msk [vmem:[%s425_s7] sm:$0xf] %vm262_vm3, %v284_v7  ;;  %v253_v9 = vadd.f32 %v281_v2, %v244_v8 }
 0x314   :  { %v285_v10 = vpack.c.bf16 %v253_v9, %v253_v9 }
 0x316   :  { %264 = vst.msk [vmem:[%s425_s7 + $0x4] sm:$0xf] %vm262_vm3, %v285_v10 }

// kernel: _lambda_.11
= control target key start
LH: loop header
LB: loop body
LE: loop exit
PB: predicated region body
PF: predicated region fallthrough
CT: control target
= control target key end

     0   :  { %s1147_s30 = smov 0   ;;  %s1149_s10 = smov 0   ;;  %s1249_s0 = inlined_call_operand.vmem [shape: bf16[2,8,32], index: 0, kind: input, shape index: {}]   ;;  %s1250_s1 = inlined_call_operand.vmem [shape: bf16[2,8,32], index: 1, kind: input, shape index: {}]   ;;  %s1251_s2 = inlined_call_operand.vmem [shape: bf16[2,8,32], index: 2, kind: input, shape index: {}]   ;;  %s1252_s3 = inlined_call_operand.vmem [shape: f32[2,1,8], index: 3, kind: input, shape index: {}]   ;;  %s1253_s4 = inlined_call_operand.vmem [shape: bf16[2,8,32], index: 4, kind: input, shape index: {}]   ;;  %s1254_s5 = inlined_call_operand.vmem [shape: bf16[32,32], index: 5, kind: input, shape index: {}]   ;;  %s1255_s6 = inlined_call_operand.vmem [shape: f32[1,32], index: 6, kind: input, shape index: {}]   ;;  %s1256_s7 = inlined_call_operand.vmem [shape: f32[1,32], index: 7, kind: input, shape index: {}]   ;;  %s1257_s8 = inlined_call_operand.vmem [shape: f32[1,32], index: 8, kind: input, shape index: {}]   ;;  %s1258_s9 = inlined_call_operand.vmem [shape: bf16[2,8,32], index: 9, kind: output, shape index: {}]  }
   0x1   :  { %s1151_s11 = smov 0  }
   0x2 LB: > { %s31_s12 = sadd.s32 1, %s1088_s10  ;;  %p952_p0 = scmp.ge.s32.totalorder %s1092_s11, 1  ;;  %s1092_s11 = sphi %s1151_s11, %s19_s11   ;;  %s1088_s10 = sphi %s1149_s10, %s1260_s10   ;;  %s1084_s30 = sphi %s1147_s30, %s1259_s30  }
   0x3   : > { %p33_p1 = scmp.ge.s32.totalorder %s31_s12, 2  ;;  %p345_p2 = scmp.lt.s32.totalorder %s1092_s11, 3 }
   0x5   : > { %s1262_s12 = smov (%p33_p1, %s31_s12), 0  ;;  %p346_p3 = pnand %p952_p0, %p345_p2 }
   0x6   : > { %p403_p4 = scmp.lt.s32.totalorder (!%p346_p3), %s1084_s30, 1  ;;  %v1094_v0 = vmov (!%p346_p3), 0.0   ;;  %vm1095_vm0 = vmmov (!%p346_p3), 0   ;;  %vm449_vm1 = vcmask (!%p346_p3), 130048   ;;  %vm504_vm2 = vcmask (!%p346_p3), 64512   ;;  %s1096_s23 = smov (!%p346_p3), 112  }
   0x7   : > { %349 = sbr.rel (%p346_p3) target bundleno = 1842 (0x732), region = 56  ;;  %987 = vmatprep.subr.bf16.mxu0 (!%p346_p3), %v1094_v0  ;;  %989 = vmatprep.mubr.msk.bf16.mxu0 (!%p346_p3), %vm1095_vm0, %v1094_v0  ;;  %vm521_vm3 = vcmask (!%p346_p3), 1043456   ;;  %v1057_v28 = vld [vmem:[%s1254_s5] sm:$0xff] (!%p346_p3)   ;;  %v1059_v52 = vld [vmem:[%s1254_s5 + $0x8] sm:$0xff] (!%p346_p3)   ;;  %vm792_vm4 = vcmask (!%p346_p3), 261120   ;;  %vm824_vm5 = vcmask (!%p346_p3), 257024  }
   0x8   : > { %999 = vmatprep.subr.bf16.mxu1 (!%p346_p3), %v1094_v0  ;;  %1001 = vmatprep.mubr.msk.bf16.mxu1 (!%p346_p3), %vm1095_vm0, %v1094_v0  ;;  %v958_v61 = vld [vmem:[%s1255_s6] ss:$0 sm:$0xff] (!%p346_p3) }
   0x9   : > { %1000 = vmatpush3.bf16.msra.mxu1 (!%p346_p3), %v1057_v28 }
   0xa   : > { %1011 = vmatprep.subr.bf16.mxu1 (!%p346_p3), %v1094_v0 }
   0xe   : > { %s1264_s30 = smov (!%p403_p4, %s1084_s30), 1 }
   0xf   : > { %s1171_s13 = sshll.u32 %s1264_s30, 2  ;;  %s420_s22 = scalar_lea.vmem %s1252_s3, %s1264_s30 }
  0x10   : > { %s413_s16 = scalar_lea.vmem %s1250_s1, %s1171_s13  ;;  %s409_s19 = scalar_lea.vmem %s1249_s0, %s1171_s13  ;;  %v960_v5 = vld [vmem:[%s420_s22] ss:$0 sm:$0xff] }
  0x11   : > { %v448_v1 = vld [vmem:[%s413_s16] sm:$0xf]  ;;  %s417_s26 = scalar_lea.vmem %s1251_s2, %s1171_s13  ;;  %s427_s16 = scalar_lea.vmem %s1253_s4, %s1171_s13 }
  0x12   : > { %v454_v2 = vsel %vm449_vm1, %v448_v1, 0  ;;  %v447_v3 = vld [vmem:[%s409_s19] sm:$0xf]  ;;  %v965_v12 = vcombine.low %v448_v1, %v448_v1  ;;  %s434_s25 = scalar_lea.vmem %s1258_s9, %s1171_s13 }
  0x13   : > { %988 = vmatpush3.bf16.xpose.msra.mxu0 %v454_v2  ;;  %v964_v13 = vcombine.low %v447_v3, %v447_v3  ;;  %v517_v19 = vld [vmem:[%s417_s26] sm:$0xf] }
  0x14   : > { %993 = vmatprep.subr.bf16.mxu0 %v1094_v0  ;;  %626 = vrot.lane.b32.xlu1 %v965_v12, %s1096_s23  ;;  %v523_v20 = vsel %vm521_vm3, %v517_v19, 0  ;;  %v967_v41 = vcombine.low %v517_v19, %v517_v19  ;;  %v437_v59 = vld [vmem:[%s427_s16] sm:$0xf] }
  0x15   : > { %v438_v60 = vunpack.c.l.bf16 %v437_v59 }
  0x17   : > { %v446_v62 = vadd.f32 %v958_v61, %v438_v60 }
  0x18   : > { %621 = vrot.lane.b32.xlu1 %v964_v13, %s1096_s23 }
  0x1a   : > { %990 = vmatmul.mubr.msk.bf16.vlgmr.msra.gmra.mrb[0].mxu0 %vm449_vm1, %v447_v3 }
  0x1b   : > { %995 = vmatprep.mubr.msk.bf16.mxu0 %vm1095_vm0, %v1094_v0  ;;  %994 = vmatpush3.bf16.msra.mxu0 %v523_v20 }
  0x1c   : > { %1005 = vmatprep.subr.bf16.mxu0 %v1094_v0 }
  0x86   : > { %v627_v23 = vpop.permute.xlu1 %626 }
  0x87   : > { %v632_v25 = vsel %vm449_vm1, %v627_v23, 0 }
  0x8a   : > { %v622_v27 = vpop.permute.xlu1 %621 }
  0xed   : > { %v490_v4 = vpop.f32.mrb[0].mxu0 }
  0xee   : > { %v496_v6 = vmul.f32 0.25, %v490_v4  ;;  %v991_v7 = vpop.f32.mrb[1].mxu0 }
  0xef   : > { %v493_v8 = vpop.f32.mrb[2].mxu0 }
  0xf0   : > { %v992_v9 = vpop.f32.mrb[3].mxu0  ;;  %v503_v10 = vadd.f32 %v960_v5, %v496_v6 }
  0xf2   : > { %v505_v11 = vsel %vm504_vm2, %v503_v10, -inf }
  0xf3   : > { %506 = vmax.xlane.f32.xlu0 %v505_v11 }
 0x180   : > { %v507_v14 = vpop.xlane.xlu0 %506 }
 0x181   : > { %v508_v15 = vsub.f32 %v503_v10, %v507_v14  ;;  %v971_v14 = vld [vmem:[%s1256_s7] ss:$0 sm:$0xff] }
 0x183   : > { %v509_v16 = vmul.f32 1.442695, %v508_v15 }
 0x185   : > { %1060 = vpow2.f32 %v509_v16  ;;  %v972_v16 = vld [vmem:[%s1257_s8] ss:$0 sm:$0xff] }
 0x18f   : > { %v1061_v17 = vpop.eup %1060 }
 0x190   : > { %v511_v18 = vsel %vm504_vm2, %v1061_v17, 0.0 }
 0x191   : > { %512 = vadd.xlane.f32.xlu0 %v511_v18 }
 0x21e   : > { %v513_v21 = vpop.xlane.xlu0 %512 }
 0x21f   : > { %1062 = vrcp.f32 %v513_v21 }
 0x229   : > { %v1063_v22 = vpop.eup %1062 }
 0x22a   : > { %v515_v24 = vmul.f32 %v1063_v22, %v1061_v17 }
 0x22c   : > { %v516_v26 = vpack.c.bf16 %v515_v24, %v515_v24 }
 0x22e   : > { %996 = vmatmul.mubr.msk.bf16.vlgmr.msra.gmra.mrb[4].mxu0 %vm504_vm2, %v516_v26 }
 0x22f   : > { %1006 = vmatpush3.bf16.xpose.msra.mxu0 %v632_v25  ;;  %1007 = vmatprep.mubr.msk.bf16.mxu0 %vm1095_vm0, %v1094_v0 }
 0x236   : > { %1008 = vmatmul.mubr.msk.bf16.vlgmr.msra.gmra.mrb[8].mxu0 %vm449_vm1, %v622_v27 }
 0x301   : > { %v559_v29 = vpop.f32.mrb[4].mxu0 }
 0x302   : > { %v565_v30 = vpack.c.bf16 %v559_v29, %v559_v29  ;;  %v997_v31 = vpop.f32.mrb[5].mxu0 }
 0x303   : > { %v562_v32 = vpop.f32.mrb[6].mxu0 }
 0x304   : > { %v998_v33 = vpop.f32.mrb[7].mxu0  ;;  %1002 = vmatmul.mubr.msk.bf16.vlgmr.msra.gmra.mrb[0].mxu1 %vm449_vm1, %v565_v30 }
 0x305   : > { %1013 = vmatprep.mubr.msk.bf16.mxu1 %vm1095_vm0, %v1094_v0 }
 0x309   : > { %v668_v34 = vpop.f32.mrb[8].mxu0 }
 0x30a   : > { %v674_v35 = vmul.f32 0.25, %v668_v34  ;;  %v1009_v36 = vpop.f32.mrb[9].mxu0 }
 0x30b   : > { %v671_v37 = vpop.f32.mrb[10].mxu0 }
 0x30c   : > { %v1010_v38 = vpop.f32.mrb[11].mxu0  ;;  %v675_v39 = vadd.f32 %v960_v5, %v674_v35 }
 0x30e   : > { %v676_v40 = vsel %vm504_vm2, %v675_v39, -inf }
 0x30f   : > { %677 = vmax.xlane.f32.xlu0 %v676_v40 }
 0x325   : > { %691 = vrot.lane.b32.xlu0 %v967_v41, %s1096_s23 }
 0x39c   : > { %v678_v42 = vpop.xlane.xlu0 %677 }
 0x39d   : > { %v679_v43 = vsub.f32 %v675_v39, %v678_v42 }
 0x39f   : > { %v680_v44 = vmul.f32 1.442695, %v679_v43 }
 0x3a0   : > { %v692_v47 = vpop.permute.xlu0 %691 }
 0x3a1   : > { %1064 = vpow2.f32 %v680_v44  ;;  %v697_v48 = vsel %vm521_vm3, %v692_v47, 0 }
 0x3a2   : > { %1012 = vmatpush3.bf16.msra.mxu1 %v697_v48 }
 0x3a3   : > { %1017 = vmatprep.subr.bf16.mxu1 %v1094_v0 }
 0x3ab   : > { %v1065_v45 = vpop.eup %1064 }
 0x3ac   : > { %v682_v46 = vsel %vm504_vm2, %v1065_v45, 0.0 }
 0x3ad   : > { %683 = vadd.xlane.f32.xlu1 %v682_v46 }
 0x43a   : > { %v684_v49 = vpop.xlane.xlu1 %683 }
 0x43b   : > { %1066 = vrcp.f32 %v684_v49 }
 0x445   : > { %v1067_v50 = vpop.eup %1066 }
 0x446   : > { %v686_v51 = vmul.f32 %v1067_v50, %v1065_v45 }
 0x448   : > { %v687_v53 = vpack.c.bf16 %v686_v51, %v686_v51 }
 0x44a   : > { %1014 = vmatmul.mubr.msk.bf16.vlgmr.msra.gmra.mrb[4].mxu1 %vm504_vm2, %v687_v53 }
 0x44b   : > { %1018 = vmatpush3.bf16.msra.mxu1 %v1059_v52  ;;  %1019 = vmatprep.mubr.msk.bf16.mxu1 %vm1095_vm0, %v1094_v0 }
 0x51d   : > { %v733_v54 = vpop.f32.mrb[4].mxu1 }
 0x51e   : > { %v739_v55 = vpack.c.bf16 %v733_v54, %v733_v54  ;;  %v1015_v56 = vpop.f32.mrb[5].mxu1 }
 0x51f   : > { %v736_v57 = vpop.f32.mrb[6].mxu1 }
 0x520   : > { %v1016_v58 = vpop.f32.mrb[7].mxu1  ;;  %1020 = vmatmul.mubr.msk.bf16.vlgmr.msra.gmra.mrb[0].mxu1 %vm449_vm1, %v739_v55 }
 0x5f3   : > { %v785_v63 = vpop.f32.mrb[0].mxu1 }
 0x5f4   : > { %v1023_v0 = vadd.f32 %v785_v63, %v446_v62  ;;  %v1021_v1 = vpop.f32.mrb[1].mxu1 }
 0x5f5   : > { %v788_v2 = vpop.f32.mrb[2].mxu1 }
 0x5f6   : > { %v1022_v3 = vpop.f32.mrb[3].mxu1  ;;  %v793_v4 = vsel %vm792_vm4, %v1023_v0, 0.0 }
 0x5f7   : > { %794 = vadd.xlane.f32.xlu0 %v793_v4 }
 0x684   : > { %v795_v5 = vpop.xlane.xlu0 %794 }
 0x685   : > { %v797_v6 = vmul.f32 0.03125, %v795_v5 }
 0x687   : > { %v798_v7 = vsub.f32 %v1023_v0, %v797_v6 }
 0x689   : > { %v799_v8 = vmul.f32 %v798_v7, %v798_v7 }
 0x68b   : > { %v800_v9 = vsel %vm792_vm4, %v799_v8, 0.0 }
 0x68c   : > { %801 = vadd.xlane.f32.xlu1 %v800_v9 }
 0x719   : > { %v802_v10 = vpop.xlane.xlu1 %801 }
 0x71a   : > { %v803_v11 = vmul.f32 0.03125, %v802_v10 }
 0x71c   : > { %v804_v12 = vadd.f32 1e-12, %v803_v11 }
 0x71e   : > { %1068 = vrsqrt.f32 %v804_v12 }
 0x728   : > { %v1069_v13 = vpop.eup %1068 }
 0x729   : > { %v806_v15 = vmul.f32 %v1069_v13, %v798_v7 }
 0x72b   : > { %v814_v17 = vmul.f32 %v971_v14, %v806_v15 }
 0x72d   : > { %v822_v18 = vadd.f32 %v972_v16, %v814_v17 }
 0x72f   : > { %v823_v19 = vpack.c.bf16 %v822_v18, %v822_v18 }
 0x731   : > { %825 = vst.msk [vmem:[%s434_s25] sm:$0xf] %vm824_vm5, %v823_v19 }
 0x732 PF: > { %s19_s11 = sadd.s32 1, %s1092_s11   ;;  %s1259_s30 = smov %s1088_s10 }
 0x733   : > { %p16_p5 = scmp.ge.s32.totalorder %s19_s11, 4   ;;  %s1260_s10 = smov %s1262_s12 }
 0x735   :  { %18 = sbr.rel (!%p16_p5) target bundleno = 2 (0x2), region = 98 }

// kernel: _lambda_.16
= control target key start
LH: loop header
LB: loop body
LE: loop exit
PB: predicated region body
PF: predicated region fallthrough
CT: control target
= control target key end

     0   :  { %v112_v0 = vmov 0.0   ;;  %vm113_vm0 = vmmov 0   ;;  %vm39_vm1 = vcmask 261120   ;;  %vm85_vm2 = vcmask 253952   ;;  %s149_s1 = inlined_call_operand.vmem [shape: bf16[32,32], index: 1, kind: input, shape index: {}]   ;;  %s150_s0 = inlined_call_operand.vmem [shape: bf16[2,32], index: 0, kind: input, shape index: {}]   ;;  %s151_s2 = inlined_call_operand.vmem [shape: f32[1,32], index: 2, kind: input, shape index: {}]   ;;  %s152_s3 = inlined_call_operand.vmem [shape: bf16[2,32], index: 3, kind: output, shape index: {}]  }
   0x1   :  { %98 = vmatprep.subr.bf16.mxu0 %v112_v0  ;;  %v108_v1 = vld [vmem:[%s149_s1] sm:$0xff]   ;;  %102 = vmatprep.mubr.msk.bf16.mxu0 %vm113_vm0, %v112_v0  ;;  %v109_v2 = vld [vmem:[%s149_s1 + $0x8] sm:$0xff]  }
   0x2   :  { %99 = vmatpush3.bf16.msra.mxu0 %v108_v1  ;;  %v15_v3 = vld [vmem:[%s150_s0] sm:$0x1] }
   0x3   :  { %100 = vmatprep.subr.bf16.mxu0 %v112_v0  ;;  %v91_v4 = vld [vmem:[%s151_s2] ss:$0 sm:$0xff] }
   0x6   :  { %101 = vmatpush3.bf16.msra.mxu0 %v109_v2 }
   0x9   :  { %103 = vmatmul.mubr.msk.bf16.vlgmr.msra.gmra.mrb[0].mxu0 %vm39_vm1, %v15_v3 }
  0xdc   :  { %v77_v5 = vpop.f32.mrb[0].mxu0 }
  0xdd   :  { %v78_v6 = vadd.f32 %v91_v4, %v77_v5  ;;  %v104_v7 = vpop.f32.mrb[1].mxu0 }
  0xde   :  { %v80_v8 = vpop.f32.mrb[2].mxu0 }
  0xdf   :  { %110 = vtanh.f32 %v78_v6  ;;  %v105_v9 = vpop.f32.mrb[3].mxu0 }
  0xe9   :  { %v111_v10 = vpop.eup %110 }
  0xea   :  { %v84_v11 = vpack.c.bf16 %v111_v10, %v111_v10 }
  0xec   :  { %86 = vst.msk [vmem:[%s152_s3] sm:$0x1] %vm85_vm2, %v84_v11 }

// kernel: _lambda_.17
= control target key start
LH: loop header
LB: loop body
LE: loop exit
PB: predicated region body
PF: predicated region fallthrough
CT: control target
= control target key end

     0   :  { %vm43_vm0 = vcmask 64512   ;;  %v540_v2 = vmov 0.0   ;;  %vm541_vm1 = vmmov 0   ;;  %s690_s0 = inlined_call_operand.vmem [shape: bf16[2,32], index: 0, kind: input, shape index: {}]   ;;  %s691_s1 = inlined_call_operand.vmem [shape: f32[2,8], index: 1, kind: input, shape index: {}]   ;;  %s692_s2 = inlined_call_operand.vmem [shape: f32[8,48], index: 2, kind: input, shape index: {}]   ;;  %s693_s3 = inlined_call_operand.vmem [shape: f32[1,48], index: 3, kind: input, shape index: {}]   ;;  %s694_s4 = inlined_call_operand.vmem [shape: bf16[32,192], index: 4, kind: input, shape index: {}]   ;;  %s695_s5 = inlined_call_operand.vmem [shape: bf16[48,192], index: 5, kind: input, shape index: {}]   ;;  %s696_s6 = inlined_call_operand.vmem [shape: f32[1,192], index: 6, kind: input, shape index: {}]   ;;  %s697_s7 = inlined_call_operand.vmem [shape: bf16[192,128], index: 7, kind: input, shape index: {}]   ;;  %s698_s8 = inlined_call_operand.vmem [shape: f32[1,128], index: 8, kind: input, shape index: {}]   ;;  %s699_s9 = inlined_call_operand.hbm [shape: f32[2,128], index: 9, kind: output, shape index: {}]  }
   0x1   :  { %v35_v0 = vld [vmem:[%s692_s2] sm:$0xff]  ;;  %480 = vmatprep.subr.mxu1 %v540_v2  ;;  %482 = vmatprep.mubr.msk.f32.mxu1 %vm541_vm1, %v540_v2  ;;  %v492_v5 = vld [vmem:[%s695_s5 + $0x10] ss:$8 sps:$4 sm:$0xff]   ;;  %v494_v6 = vld [vmem:[%s695_s5 + $0x14] ss:$8 sps:$4 sm:$0xff]  }
   0x2   :  { %v34_v1 = vld [vmem:[%s691_s1] sm:$0x3]  ;;  %481 = vmatpush3.msra.mxu1 %v35_v0  ;;  %v491_v4 = vld [vmem:[%s695_s5 + $0x4] ss:$8 sps:$4 sm:$0xff]  }
   0x3   :  { %v489_v3 = vld [vmem:[%s695_s5] ss:$8 sps:$4 sm:$0xff]   ;;  %483 = vmatmul.mubr.msk.f32.vlgmr.msra.gmra.mrb[0].mxu1 %vm43_vm0, %v34_v1  ;;  %164 = vmatprep.subr.bf16.mxu1 %v491_v4 }
   0x4   :  { %165 = vmatpush1.bf16.msra.mxu1 %v489_v3 }
   0x5   :  { %166 = vmatprep.subr.bf16.mxu1 %v494_v6 }
   0x8   :  { %167 = vmatpush1.bf16.msra.mxu1 %v492_v5 }
   0x9   :  { %14 = vsyncpa [#allocation3], 0  ;;  %v497_v7 = vld [vmem:[%s695_s5 + $0x24] ss:$8 sps:$4 sm:$0xff]   ;;  %v495_v8 = vld [vmem:[%s695_s5 + $0x20] ss:$8 sps:$4 sm:$0xff]   ;;  %v272_v33 = vlaneseq }
   0xa   :  { %168 = vmatprep.subr.bf16.mxu1 %v497_v7  ;;  %v500_v9 = vld [vmem:[%s694_s4 + $0x4] ss:$8 sps:$4 sm:$0xff]   ;;  %v542_v10 = vmov 0   ;;  %v506_v13 = vld [vmem:[%s697_s7 + $0x10] sm:$0xff]   ;;  %v507_v14 = vld [vmem:[%s697_s7 + $0x18] sm:$0xff]   ;;  %vm160_vm2 = vcmask 392192  }
   0xb   :  { %196 = vmatprep.mubr.bf16.mxu1 %v542_v10  ;;  %395 = vmatprep.subr.bf16.mxu0 %v542_v10  ;;  %v504_v11 = vld [vmem:[%s697_s7] sm:$0xff]   ;;  %v505_v12 = vld [vmem:[%s697_s7 + $0x8] sm:$0xff]   ;;  %v510_v17 = vld [vmem:[%s697_s7 + $0x30] sm:$0xff]   ;;  %vm225_vm3 = vcmask 261120   ;;  %v273_v34 = vshrl.u32 %v272_v33, 7  ;;  %vm391_vm4 = vcmask 523264  }
   0xc   :  { %169 = vmatpush1.bf16.msra.mxu1 %v495_v8  ;;  %396 = vmatpush1.bf16.msra.mxu0 %v504_v11  ;;  %v508_v15 = vld [vmem:[%s697_s7 + $0x20] sm:$0xff]   ;;  %v509_v16 = vld [vmem:[%s697_s7 + $0x28] sm:$0xff]   ;;  %v503_v25 = vld [vmem:[%s694_s4 + $0x14] ss:$8 sps:$4 sm:$0xff]   ;;  %s543_s12 = smov [#allocation2]  }
   0xd   :  { %229 = vmatprep.subr.bf16.mxu1 %v500_v9  ;;  %397 = vmatprep.subr.bf16.mxu0 %v542_v10  ;;  %v450_v18 = vld [vmem:[%s693_s3] ss:$0 sm:$0xff]  ;;  %v501_v26 = vld [vmem:[%s694_s4 + $0x10] ss:$8 sps:$4 sm:$0xff]   ;;  %v513_v30 = vld [vmem:[%s697_s7 + $0x48] sm:$0xff]   ;;  %v274_v39 = vsub.s32 0, %v273_v34 }
   0xe   :  { %v498_v23 = vld [vmem:[%s694_s4] ss:$8 sps:$4 sm:$0xff]   ;;  %v511_v28 = vld [vmem:[%s697_s7 + $0x38] sm:$0xff]   ;;  %v514_v31 = vld [vmem:[%s697_s7 + $0x50] sm:$0xff]   ;;  %v278_v41 = vsub.s32 1, %v273_v34  ;;  %s442_s13 = sshll.u32 %s543_s12, 4  ;;  %s443_s13 = int_to_ptr.vmem [resolvable:$true] %s442_s13 }
   0xf   :  { %v118_v27 = vld [vmem:[%s690_s0] sm:$0x1]  ;;  %v515_v32 = vld [vmem:[%s697_s7 + $0x58] sm:$0xff]   ;;  %s516_s14 = scalar_lea.vmem %s443_s13, 32  ;;  %p521_p1 = scmp.lt.s32.totalorder %s443_s13, %s443_s13 }
  0x10   :  { %398 = vmatpush1.bf16.msra.mxu0 %v505_v12  ;;  %v512_v29 = vld [vmem:[%s697_s7 + $0x40] sm:$0xff]   ;;  %p517_p0 = scmp.ne.s32.totalorder %s443_s13, %s516_s14  ;;  %p522_p2 = scmp.lt.s32.totalorder %s516_s14, %s516_s14 }
  0x11   :  { %399 = vmatprep.subr.bf16.mxu0 %v542_v10  ;;  %v270_v40 = vld [vmem:[%s696_s6] sm:$0x3] }
  0x12   :  { %v275_v42 = vrot.slane %v270_v40, %v274_v39  ;;  %v279_v44 = vrot.slane %v270_v40, %v278_v41  ;;  %v464_v56 = vld [vmem:[%s698_s8] ss:$0 sm:$0xff]  ;;  %p523_p3 = por %p522_p2, %p521_p1 }
  0x14   :  { %400 = vmatpush1.bf16.msra.mxu0 %v506_v13  ;;  %p524_p4 = pnand %p523_p3, %p517_p0 }
  0x15   :  { %401 = vmatprep.subr.bf16.mxu0 %v542_v10 }
  0x18   :  { %402 = vmatpush1.bf16.msra.mxu0 %v507_v14 }
  0x19   :  { %403 = vmatprep.subr.bf16.mxu0 %v542_v10 }
  0x1c   :  { %404 = vmatpush1.bf16.msra.mxu0 %v508_v15 }
  0x1d   :  { %405 = vmatprep.subr.bf16.mxu0 %v542_v10 }
  0x20   :  { %406 = vmatpush1.bf16.msra.mxu0 %v509_v16 }
  0x21   :  { %407 = vmatprep.subr.bf16.mxu0 %v542_v10 }
  0x24   :  { %408 = vmatpush1.bf16.msra.mxu0 %v510_v17 }
  0x25   :  { %409 = vmatprep.subr.bf16.mxu0 %v542_v10 }
  0x28   :  { %410 = vmatpush1.bf16.msra.mxu0 %v511_v28 }
  0x29   :  { %411 = vmatprep.subr.bf16.mxu0 %v542_v10 }
  0x2c   :  { %412 = vmatpush1.bf16.msra.mxu0 %v512_v29 }
  0x2d   :  { %413 = vmatprep.subr.bf16.mxu0 %v542_v10 }
  0x30   :  { %414 = vmatpush1.bf16.msra.mxu0 %v513_v30 }
  0x31   :  { %415 = vmatprep.subr.bf16.mxu0 %v542_v10 }
  0x34   :  { %416 = vmatpush1.bf16.msra.mxu0 %v514_v31 }
  0x35   :  { %417 = vmatprep.subr.bf16.mxu0 %v542_v10 }
  0x38   :  { %418 = vmatpush1.bf16.msra.mxu0 %v515_v32 }
  0xd6   :  { %v113_v19 = vpop.f32.mrb[0].mxu1 }
  0xd7   :  { %v114_v20 = vadd.f32 %v450_v18, %v113_v19  ;;  %v484_v21 = vpop.f32.mrb[1].mxu1 }
  0xd9   :  { %v117_v22 = vmax.f32 %v114_v20, 0.0 }
  0xdb   :  { %v123_v24 = vpack.c.bf16 %v117_v22, %v117_v22 }
  0xdd   :  { %458 = vmatmul.mubr.msk.bf16.vlgmr.msra.gmra.mrb[4].mxu1 %vm160_vm2, %v123_v24 }
  0xde   :  { %230 = vmatpush1.bf16.msra.mxu1 %v498_v23  ;;  %261 = vmatprep.mubr.bf16.mxu1 %v542_v10 }
  0xdf   :  { %231 = vmatprep.subr.bf16.mxu1 %v503_v25 }
  0xe2   :  { %232 = vmatpush1.bf16.msra.mxu1 %v501_v26 }
  0xe5   :  { %463 = vmatmul.mubr.msk.bf16.vlgmr.msra.gmra.mrb[8].mxu1 %vm225_vm3, %v118_v27 }
 0x1b0   :  { %v198_v35 = vpop.f32.mrb[4].mxu1 }
 0x1b1   :  { %v200_v36 = vpop.f32.mrb[5].mxu1 }
 0x1b2   :  { %v202_v37 = vpop.f32.mrb[6].mxu1 }
 0x1b3   :  { %v203_v38 = vpop.f32.mrb[7].mxu1 }
 0x1b8   :  { %v263_v43 = vpop.f32.mrb[8].mxu1 }
 0x1b9   :  { %v264_v45 = vadd.f32 %v263_v43, %v198_v35  ;;  %v265_v46 = vpop.f32.mrb[9].mxu1 }
 0x1ba   :  { %v266_v47 = vadd.f32 %v265_v46, %v200_v36  ;;  %v267_v48 = vpop.f32.mrb[10].mxu1 }
 0x1bb   :  { %v282_v49 = vadd.f32 %v275_v42, %v264_v45  ;;  %v268_v50 = vpop.f32.mrb[11].mxu1 }
 0x1bc   :  { %v283_v51 = vadd.f32 %v279_v44, %v266_v47 }
 0x1bd   :  { %v284_v52 = vmax.f32 %v282_v49, 0.0 }
 0x1be   :  { %v285_v53 = vmax.f32 %v283_v51, 0.0 }
 0x1bf   :  { %v286_v55 = vpack.c.bf16 %v284_v52, %v284_v52 }
 0x1c0   :  { %v287_v54 = vpack.c.bf16 %v285_v53, %v285_v53 }
 0x1c2   :  { %477 = vmatprep.mubr.msk.bf16.mxu0 %vm391_vm4, %v287_v54 }
 0x1c3   :  { %428 = vmatmul.mubr.bf16.vlgmr.msra.gmra.mrb[0].mxu0 %v286_v55 }
 0x296   :  { %v429_v57 = vpop.f32.mrb[0].mxu0 }
 0x297   :  { %v430_v58 = vadd.f32 %v464_v56, %v429_v57  ;;  %v431_v59 = vpop.f32.mrb[1].mxu0 }
 0x298   :  { %v432_v60 = vpop.f32.mrb[2].mxu0 }
 0x299   :  { %435 = vst [vmem:[#allocation2] sm:$0x3] %v430_v58  ;;  %v433_v61 = vpop.f32.mrb[3].mxu0 }
 0x29a   :  { %527 = shalt.err (!%p524_p4)
}
 0x29b   :  { %s528_s8 = scalar_lea.hbm %s699_s9, 32 }
 0x29c   :  { %p529_p5 = scmp.ne.s32.totalorder %s699_s9, %s528_s8  ;;  %p532_p6 = scmp.lt.u32.totalorder %s528_s8, %s699_s9 }
 0x29e   :  { %p534_p7 = pnand %p532_p6, %p529_p5 }
 0x2a0   :  { %537 = shalt.err (!%p534_p7)
}
 0x2a1   :  { %445 = dma.vmem_to_hbm [thread:$0]  %s443_s13, 32, %s699_s9, [#allocation3]  }
 0x2a2   :  { %538 = dma.done.wait [#allocation3], 32  }
 0x2a3   :  { %539 = vsyncadd [#allocation3], 4294967264 }
 0x2a4   :  { %449 = vsyncpa [#allocation3], 1 }

</bundles_post_ra>
